<compile_context>
chip_gen: v6e
topology: v6e:2x2x1
jax: 0.10.0
libtpu: 0.0.40
codegen_flags: <defaults>
</compile_context>

<pallas_src>
import functools

import jax
import jax.numpy as jnp
from jax.experimental import pallas as pl
from jax.experimental.pallas import tpu as pltpu


OUT_DIM = 5 * (8 * 2 + 1)  # 85
LANE = 128


def _round_up(n, m):
    return ((n + m - 1) // m) * m


# --------------------------------------------------------------------------
# Kernel
# --------------------------------------------------------------------------
def neck_kernel(x_ref,
                w1_ref, b1_ref,          # Neck.fc1:     512 -> 256
                wr1_ref, br1_ref,        # ResBlock.fc1: 256 -> 128
                wr2_ref, br2_ref,        # ResBlock.fc2: 128 -> 256
                wr3_ref, br3_ref,        # ResBlock.fc3: 256 -> 128
                w2_ref, b2_ref,          # Neck.fc2:     128 -> 128 (padded 85)
                out_ref,
                *, sub_m, n_sub):
    # MXU operand dtype comes from the (pre-cast) weights; elementwise in f32.
    cdt = w1_ref.dtype

    def run_subtile(j):
        row0 = j * sub_m                       # static offset
        x = x_ref[pl.ds(row0, sub_m), :].astype(cdt)

        # Neck.fc1 + ReLU
        h = jnp.dot(x, w1_ref[...], preferred_element_type=jnp.float32) + b1_ref[...]
        h = jnp.maximum(h, 0.0)

        # ResBlock.fc1 + ReLU -> identity
        ident = jnp.dot(h.astype(cdt), wr1_ref[...],
                        preferred_element_type=jnp.float32) + br1_ref[...]
        ident = jnp.maximum(ident, 0.0)

        # ResBlock.fc2 + ReLU
        t = jnp.dot(ident.astype(cdt), wr2_ref[...],
                    preferred_element_type=jnp.float32) + br2_ref[...]
        t = jnp.maximum(t, 0.0)

        # ResBlock.fc3, residual add, ReLU
        t = jnp.dot(t.astype(cdt), wr3_ref[...],
                    preferred_element_type=jnp.float32) + br3_ref[...]
        t = jnp.maximum(t + ident, 0.0)

        # Neck.fc2 + ReLU (lane-dense 128-wide store; padded cols stay 0)
        o = jnp.dot(t.astype(cdt), w2_ref[...],
                    preferred_element_type=jnp.float32) + b2_ref[...]
        out_ref[pl.ds(row0, sub_m), :] = jnp.maximum(o, 0.0)

    # Static unroll: independent row sub-tiles let the VLIW scheduler overlap
    # MXU (vmatmul) of one sub-tile with VPU (bias/ReLU/cast) of the previous.
    for j in range(n_sub):
        run_subtile(j)


# --------------------------------------------------------------------------
# Params
# --------------------------------------------------------------------------
def init_linear(key, in_f, out_f):
    """PyTorch default init U(-1/sqrt(in_f), 1/sqrt(in_f)).
    Weight returned pre-transposed to (in_f, out_f); bias as (1, out_f)."""
    kw, kb = jax.random.split(key)
    bound = 1.0 / jnp.sqrt(jnp.float32(in_f))
    w = jax.random.uniform(kw, (in_f, out_f), jnp.float32, -bound, bound)
    b = jax.random.uniform(kb, (1, out_f), jnp.float32, -bound, bound)
    return w, b


def prepare_params(params, compute_dtype=jnp.bfloat16):
    """One-time parameter prep (do NOT call per forward):
    zero-pad the final 128->85 layer to 128 lanes and cast MXU operands."""
    (w1, b1), (wr1, br1), (wr2, br2), (wr3, br3), (w2, b2) = params
    out_dim = w2.shape[1]
    pad_n = _round_up(out_dim, LANE)
    w2p = jnp.pad(w2, ((0, 0), (0, pad_n - out_dim)))
    b2p = jnp.pad(b2, ((0, 0), (0, pad_n - out_dim)))
    ws = tuple(jnp.asarray(w, compute_dtype) for w in (w1, wr1, wr2, wr3, w2p))
    bs = tuple(jnp.asarray(b, jnp.float32) for b in (b1, br1, br2, br3, b2p))
    return {"ws": ws, "bs": bs, "out_dim": out_dim, "pad_n": pad_n}


# --------------------------------------------------------------------------
# Forward
# --------------------------------------------------------------------------
def _select_bm(batch, block_m):
    bm = max(int(block_m), 128)          # floor: avoid tiny MXU passes / step overhead
    half = -(-batch // 2)                # cdiv(B, 2): keep >= 2 grid steps (v7x megacore)
    bm = min(bm, _round_up(half, 8))
    if bm >= 256:
        bm -= bm % 128                   # MXU-friendly multiple of 128
    return max(_round_up(bm, 8), 8)


def neck_forward(x, prepared, *, block_m=512, slice_output=True):
    """Fused Neck forward. x: (B, 512) f32 -> (B, 85) f32
    (or (B, 128) lane-dense, zero-padded, if slice_output=False)."""
    ws, bs = prepared["ws"], prepared["bs"]
    out_dim, pad_n = prepared["out_dim"], prepared["pad_n"]
    B, F = x.shape

    bm = _select_bm(B, block_m)
    grid = (pl.cdiv(B, bm),)             # ragged last block: OOB writes dropped

    # In-kernel M sub-tiling (256 = MXU row dim on v6e/v7x).
    if bm > 256 and bm % 256 == 0:
        sub_m, n_sub = 256, bm // 256
    else:
        sub_m, n_sub = bm, 1

    def act_spec(n):
        return pl.BlockSpec((bm, n), lambda i: (i, 0))

    def resident_spec(shape):
        # Constant block index -> DMA'd once, VMEM-resident across grid steps.
        return pl.BlockSpec(shape, lambda i: (0, 0))

    in_specs = [act_spec(F)]
    operands = [x]
    for w, b in zip(ws, bs):
        in_specs += [resident_spec(w.shape), resident_spec(b.shape)]
        operands += [w, b]

    cp_kwargs = dict(dimension_semantics=("parallel",))
    if bm >= 1024:
        # x dbl-buf ~4 KiB/row + out dbl-buf ~1 KiB/row + temps + ~2 MiB weights.
        cp_kwargs["vmem_limit_bytes"] = min((bm * 16 << 10) + (8 << 20), 96 << 20)

    out = pl.pallas_call(
        functools.partial(neck_kernel, sub_m=sub_m, n_sub=n_sub),
        out_shape=jax.ShapeDtypeStruct((B, pad_n), jnp.float32),
        grid=grid,
        in_specs=in_specs,
        out_specs=act_spec(pad_n),
        compiler_params=pltpu.CompilerParams(**cp_kwargs),
    )(*operands)

    if slice_output:
        return out[:, :out_dim]
    return out  # padded columns are exactly zero (ReLU of zero-padded weights)


# --------------------------------------------------------------------------
# Reference & test
# --------------------------------------------------------------------------
def neck_reference(x, params):
    """Pure-JAX high-precision reference matching the PyTorch f32 forward."""
    hp = jax.lax.Precision.HIGHEST
    (w1, b1), (wr1, br1), (wr2, br2), (wr3, br3), (w2, b2) = params
    dot = lambda a, w: jnp.dot(a, w, precision=hp)
    h = jax.nn.relu(dot(x, w1) + b1)
    ident = jax.nn.relu(dot(h, wr1) + br1)
    t = jax.nn.relu(dot(ident, wr2) + br2)
    t = dot(t, wr3) + br3
    t = jax.nn.relu(t + ident)
    return jax.nn.relu(dot(t, w2) + b2)


if __name__ == "__main__":
    key = jax.random.PRNGKey(0)
    kx, kx2, k1, k2, k3, k4, k5 = jax.random.split(key, 7)

    raw_params = (
        init_linear(k1, 512, 256),       # Neck.fc1
        init_linear(k2, 256, 128),       # ResBlock.fc1
        init_linear(k3, 128, 256),       # ResBlock.fc2
        init_linear(k4, 256, 128),       # ResBlock.fc3
        init_linear(k5, 128, OUT_DIM),   # Neck.fc2 -> 85
    )

    # Small batch (not a tile multiple -> exercises ragged last block + 2-step grid).
    B = 50
    x = jax.random.normal(kx, (B, 512), jnp.float32)
    ref = neck_reference(x, raw_params)

    # Exact path: f32 MXU operands (faithful to the PyTorch f32 forward).
    prep_f32 = prepare_params(raw_params, compute_dtype=jnp.float32)
    out_f32 = jax.block_until_ready(neck_forward(x, prep_f32))
    assert out_f32.shape == (B, OUT_DIM), out_f32.shape
    assert jnp.allclose(out_f32, ref, atol=1e-3, rtol=1e-3), "f32 mismatch vs reference"

    # Fast path: bf16 MXU operands / f32 accumulation (full-rate MXU).
    prep_bf16 = prepare_params(raw_params, compute_dtype=jnp.bfloat16)
    out_bf16 = jax.block_until_ready(neck_forward(x, prep_bf16))
    assert out_bf16.shape == (B, OUT_DIM), out_bf16.shape
    assert jnp.allclose(out_bf16, ref, atol=1e-1, rtol=5e-2), "bf16 mismatch vs reference"

    # Larger batch: exercises bm=512 with 2 in-kernel sub-tiles + ragged last block.
    B2 = 1100
    x2 = jax.random.normal(kx2, (B2, 512), jnp.float32)
    ref2 = neck_reference(x2, raw_params)
    out2 = jax.block_until_ready(neck_forward(x2, prep_f32, block_m=512))
    assert out2.shape == (B2, OUT_DIM), out2.shape
    assert jnp.allclose(out2, ref2, atol=1e-3, rtol=1e-3), "large-batch mismatch vs reference"

    print("KERNEL_OK")
</pallas_src>

<mosaic_0001>
module attributes {stable_mosaic.version = 11 : i64} {
  func.func @neck_kernel(%arg0: i32, %arg1: memref<32x512xf32, #tpu.memory_space<vmem>>, %arg2: memref<512x256xf32, #tpu.memory_space<vmem>>, %arg3: memref<1x256xf32, #tpu.memory_space<vmem>>, %arg4: memref<256x128xf32, #tpu.memory_space<vmem>>, %arg5: memref<1x128xf32, #tpu.memory_space<vmem>>, %arg6: memref<128x256xf32, #tpu.memory_space<vmem>>, %arg7: memref<1x256xf32, #tpu.memory_space<vmem>>, %arg8: memref<256x128xf32, #tpu.memory_space<vmem>>, %arg9: memref<1x128xf32, #tpu.memory_space<vmem>>, %arg10: memref<128x128xf32, #tpu.memory_space<vmem>>, %arg11: memref<1x128xf32, #tpu.memory_space<vmem>>, %arg12: memref<32x128xf32, #tpu.memory_space<vmem>>) attributes {dimension_semantics = [#tpu.dimension_semantics<parallel>], iteration_bounds = array<i64: 2>, scalar_prefetch = 0 : i64, scratch_operands = 0 : i64, tpu.core_type = #tpu.core_type<tc>, window_params = [{transform_indices = @transform_0, window_bounds = array<i64: 32, 512>}, {pipeline_mode = #tpu.pipeline_mode<synchronous>, transform_indices = @transform_1, window_bounds = array<i64: 512, 256>}, {pipeline_mode = #tpu.pipeline_mode<synchronous>, transform_indices = @transform_2, window_bounds = array<i64: 1, 256>}, {pipeline_mode = #tpu.pipeline_mode<synchronous>, transform_indices = @transform_3, window_bounds = array<i64: 256, 128>}, {pipeline_mode = #tpu.pipeline_mode<synchronous>, transform_indices = @transform_4, window_bounds = array<i64: 1, 128>}, {pipeline_mode = #tpu.pipeline_mode<synchronous>, transform_indices = @transform_5, window_bounds = array<i64: 128, 256>}, {pipeline_mode = #tpu.pipeline_mode<synchronous>, transform_indices = @transform_6, window_bounds = array<i64: 1, 256>}, {pipeline_mode = #tpu.pipeline_mode<synchronous>, transform_indices = @transform_7, window_bounds = array<i64: 256, 128>}, {pipeline_mode = #tpu.pipeline_mode<synchronous>, transform_indices = @transform_8, window_bounds = array<i64: 1, 128>}, {pipeline_mode = #tpu.pipeline_mode<synchronous>, transform_indices = @transform_9, window_bounds = array<i64: 128, 128>}, {pipeline_mode = #tpu.pipeline_mode<synchronous>, transform_indices = @transform_10, window_bounds = array<i64: 1, 128>}, {transform_indices = @transform_11, window_bounds = array<i64: 32, 128>}]} {
    %c0 = arith.constant 0 : index
    %c0_0 = arith.constant 0 : index
    %0 = vector.load %arg1[%c0, %c0_0] : memref<32x512xf32, #tpu.memory_space<vmem>>, vector<32x512xf32>
    %c0_1 = arith.constant 0 : index
    %c0_2 = arith.constant 0 : index
    %1 = vector.load %arg2[%c0_1, %c0_2] : memref<512x256xf32, #tpu.memory_space<vmem>>, vector<512x256xf32>
    %cst = arith.constant dense<0.000000e+00> : vector<32x256xf32>
    %2 = tpu.matmul %0, %1, %cst {dimension_numbers = #tpu.dot_dimension_numbers<[1], [0], [0], [1], [0, 0, 1, 1], [], []>} : vector<32x512xf32>, vector<512x256xf32>, vector<32x256xf32> -> vector<32x256xf32>
    %c0_3 = arith.constant 0 : index
    %c0_4 = arith.constant 0 : index
    %3 = vector.load %arg3[%c0_3, %c0_4] : memref<1x256xf32, #tpu.memory_space<vmem>>, vector<1x256xf32>
    %4 = vector.broadcast %3 : vector<1x256xf32> to vector<32x256xf32>
    %5 = arith.addf %2, %4 : vector<32x256xf32>
    %cst_5 = arith.constant 0.000000e+00 : f32
    %6 = vector.broadcast %cst_5 : f32 to vector<32x256xf32>
    %7 = arith.maximumf %5, %6 : vector<32x256xf32>
    %c0_6 = arith.constant 0 : index
    %c0_7 = arith.constant 0 : index
    %8 = vector.load %arg4[%c0_6, %c0_7] : memref<256x128xf32, #tpu.memory_space<vmem>>, vector<256x128xf32>
    %cst_8 = arith.constant dense<0.000000e+00> : vector<32x128xf32>
    %9 = tpu.matmul %7, %8, %cst_8 {dimension_numbers = #tpu.dot_dimension_numbers<[1], [0], [0], [1], [0, 0, 1, 1], [], []>} : vector<32x256xf32>, vector<256x128xf32>, vector<32x128xf32> -> vector<32x128xf32>
    %c0_9 = arith.constant 0 : index
    %c0_10 = arith.constant 0 : index
    %10 = vector.load %arg5[%c0_9, %c0_10] : memref<1x128xf32, #tpu.memory_space<vmem>>, vector<1x128xf32>
    %11 = vector.broadcast %10 : vector<1x128xf32> to vector<32x128xf32>
    %12 = arith.addf %9, %11 : vector<32x128xf32>
    %cst_11 = arith.constant 0.000000e+00 : f32
    %13 = vector.broadcast %cst_11 : f32 to vector<32x128xf32>
    %14 = arith.maximumf %12, %13 : vector<32x128xf32>
    %c0_12 = arith.constant 0 : index
    %c0_13 = arith.constant 0 : index
    %15 = vector.load %arg6[%c0_12, %c0_13] : memref<128x256xf32, #tpu.memory_space<vmem>>, vector<128x256xf32>
    %cst_14 = arith.constant dense<0.000000e+00> : vector<32x256xf32>
    %16 = tpu.matmul %14, %15, %cst_14 {dimension_numbers = #tpu.dot_dimension_numbers<[1], [0], [0], [1], [0, 0, 1, 1], [], []>} : vector<32x128xf32>, vector<128x256xf32>, vector<32x256xf32> -> vector<32x256xf32>
    %c0_15 = arith.constant 0 : index
    %c0_16 = arith.constant 0 : index
    %17 = vector.load %arg7[%c0_15, %c0_16] : memref<1x256xf32, #tpu.memory_space<vmem>>, vector<1x256xf32>
    %18 = vector.broadcast %17 : vector<1x256xf32> to vector<32x256xf32>
    %19 = arith.addf %16, %18 : vector<32x256xf32>
    %cst_17 = arith.constant 0.000000e+00 : f32
    %20 = vector.broadcast %cst_17 : f32 to vector<32x256xf32>
    %21 = arith.maximumf %19, %20 : vector<32x256xf32>
    %c0_18 = arith.constant 0 : index
    %c0_19 = arith.constant 0 : index
    %22 = vector.load %arg8[%c0_18, %c0_19] : memref<256x128xf32, #tpu.memory_space<vmem>>, vector<256x128xf32>
    %cst_20 = arith.constant dense<0.000000e+00> : vector<32x128xf32>
    %23 = tpu.matmul %21, %22, %cst_20 {dimension_numbers = #tpu.dot_dimension_numbers<[1], [0], [0], [1], [0, 0, 1, 1], [], []>} : vector<32x256xf32>, vector<256x128xf32>, vector<32x128xf32> -> vector<32x128xf32>
    %c0_21 = arith.constant 0 : index
    %c0_22 = arith.constant 0 : index
    %24 = vector.load %arg9[%c0_21, %c0_22] : memref<1x128xf32, #tpu.memory_space<vmem>>, vector<1x128xf32>
    %25 = vector.broadcast %24 : vector<1x128xf32> to vector<32x128xf32>
    %26 = arith.addf %23, %25 : vector<32x128xf32>
    %27 = arith.addf %26, %14 : vector<32x128xf32>
    %cst_23 = arith.constant 0.000000e+00 : f32
    %28 = vector.broadcast %cst_23 : f32 to vector<32x128xf32>
    %29 = arith.maximumf %27, %28 : vector<32x128xf32>
    %c0_24 = arith.constant 0 : index
    %c0_25 = arith.constant 0 : index
    %30 = vector.load %arg10[%c0_24, %c0_25] : memref<128x128xf32, #tpu.memory_space<vmem>>, vector<128x128xf32>
    %cst_26 = arith.constant dense<0.000000e+00> : vector<32x128xf32>
    %31 = tpu.matmul %29, %30, %cst_26 {dimension_numbers = #tpu.dot_dimension_numbers<[1], [0], [0], [1], [0, 0, 1, 1], [], []>} : vector<32x128xf32>, vector<128x128xf32>, vector<32x128xf32> -> vector<32x128xf32>
    %c0_27 = arith.constant 0 : index
    %c0_28 = arith.constant 0 : index
    %32 = vector.load %arg11[%c0_27, %c0_28] : memref<1x128xf32, #tpu.memory_space<vmem>>, vector<1x128xf32>
    %33 = vector.broadcast %32 : vector<1x128xf32> to vector<32x128xf32>
    %34 = arith.addf %31, %33 : vector<32x128xf32>
    %cst_29 = arith.constant 0.000000e+00 : f32
    %35 = vector.broadcast %cst_29 : f32 to vector<32x128xf32>
    %36 = arith.maximumf %34, %35 : vector<32x128xf32>
    %c0_30 = arith.constant 0 : index
    %c0_31 = arith.constant 0 : index
    %37 = vector.load %arg12[%c0_30, %c0_31] : memref<32x128xf32, #tpu.memory_space<vmem>>, vector<32x128xf32>
    tpu.vector_store %arg12[%c0_30, %c0_31], %36 {strides = array<i32>} : memref<32x128xf32, #tpu.memory_space<vmem>>, vector<32x128xf32>,
    return
  }
  func.func @transform_0(%arg0: i32) -> (i32, i32) {
    %c0_i32 = arith.constant 0 : i32
    %c0_i32_0 = arith.constant 0 : i32
    return %arg0, %c0_i32 : i32, i32
  }
  func.func @transform_1(%arg0: i32) -> (i32, i32) {
    %c0_i32 = arith.constant 0 : i32
    %c0_i32_0 = arith.constant 0 : i32
    %c0_i32_1 = arith.constant 0 : i32
    return %c0_i32, %c0_i32_0 : i32, i32
  }
  func.func @transform_2(%arg0: i32) -> (i32, i32) {
    %c0_i32 = arith.constant 0 : i32
    %c0_i32_0 = arith.constant 0 : i32
    %c0_i32_1 = arith.constant 0 : i32
    return %c0_i32, %c0_i32_0 : i32, i32
  }
  func.func @transform_3(%arg0: i32) -> (i32, i32) {
    %c0_i32 = arith.constant 0 : i32
    %c0_i32_0 = arith.constant 0 : i32
    %c0_i32_1 = arith.constant 0 : i32
    return %c0_i32, %c0_i32_0 : i32, i32
  }
  func.func @transform_4(%arg0: i32) -> (i32, i32) {
    %c0_i32 = arith.constant 0 : i32
    %c0_i32_0 = arith.constant 0 : i32
    %c0_i32_1 = arith.constant 0 : i32
    return %c0_i32, %c0_i32_0 : i32, i32
  }
  func.func @transform_5(%arg0: i32) -> (i32, i32) {
    %c0_i32 = arith.constant 0 : i32
    %c0_i32_0 = arith.constant 0 : i32
    %c0_i32_1 = arith.constant 0 : i32
    return %c0_i32, %c0_i32_0 : i32, i32
  }
  func.func @transform_6(%arg0: i32) -> (i32, i32) {
    %c0_i32 = arith.constant 0 : i32
    %c0_i32_0 = arith.constant 0 : i32
    %c0_i32_1 = arith.constant 0 : i32
    return %c0_i32, %c0_i32_0 : i32, i32
  }
  func.func @transform_7(%arg0: i32) -> (i32, i32) {
    %c0_i32 = arith.constant 0 : i32
    %c0_i32_0 = arith.constant 0 : i32
    %c0_i32_1 = arith.constant 0 : i32
    return %c0_i32, %c0_i32_0 : i32, i32
  }
  func.func @transform_8(%arg0: i32) -> (i32, i32) {
    %c0_i32 = arith.constant 0 : i32
    %c0_i32_0 = arith.constant 0 : i32
    %c0_i32_1 = arith.constant 0 : i32
    return %c0_i32, %c0_i32_0 : i32, i32
  }
  func.func @transform_9(%arg0: i32) -> (i32, i32) {
    %c0_i32 = arith.constant 0 : i32
    %c0_i32_0 = arith.constant 0 : i32
    %c0_i32_1 = arith.constant 0 : i32
    return %c0_i32, %c0_i32_0 : i32, i32
  }
  func.func @transform_10(%arg0: i32) -> (i32, i32) {
    %c0_i32 = arith.constant 0 : i32
    %c0_i32_0 = arith.constant 0 : i32
    %c0_i32_1 = arith.constant 0 : i32
    return %c0_i32, %c0_i32_0 : i32, i32
  }
  func.func @transform_11(%arg0: i32) -> (i32, i32) {
    %c0_i32 = arith.constant 0 : i32
    %c0_i32_0 = arith.constant 0 : i32
    return %arg0, %c0_i32 : i32, i32
  }
}

</mosaic_0001>

<bundles_post_ra>
// kernel: tpu_custom_call.1
= control target key start
LH: loop header
LB: loop body
LE: loop exit
PB: predicated region body
PF: predicated region fallthrough
CT: control target
= control target key end

     0   :  { %s2423_s0 = inlined_call_operand.hbm [shape: f32[50,512], index: 0, kind: input, shape index: {}]   ;;  %s2424_s1 = inlined_call_operand.hbm [shape: f32[512,256], index: 1, kind: input, shape index: {}]   ;;  %s2425_s2 = inlined_call_operand.vmem [shape: f32[1,256], index: 2, kind: input, shape index: {}]   ;;  %s2426_s3 = inlined_call_operand.hbm [shape: f32[256,128], index: 3, kind: input, shape index: {}]   ;;  %s2427_s4 = inlined_call_operand.vmem [shape: f32[1,128], index: 4, kind: input, shape index: {}]   ;;  %s2428_s5 = inlined_call_operand.hbm [shape: f32[128,256], index: 5, kind: input, shape index: {}]   ;;  %s2429_s6 = inlined_call_operand.vmem [shape: f32[1,256], index: 6, kind: input, shape index: {}]   ;;  %s2430_s7 = inlined_call_operand.hbm [shape: f32[256,128], index: 7, kind: input, shape index: {}]   ;;  %s2431_s8 = inlined_call_operand.vmem [shape: f32[1,128], index: 8, kind: input, shape index: {}]   ;;  %s2432_s9 = inlined_call_operand.hbm [shape: f32[128,128], index: 9, kind: input, shape index: {}]   ;;  %s2433_s10 = inlined_call_operand.vmem [shape: f32[1,128], index: 10, kind: input, shape index: {}]   ;;  %s2434_s11 = inlined_call_operand.hbm [shape: f32[50,128], index: 11, kind: output, shape index: {}]  }
   0x1   :  { %2443 = sst [smem:[#allocation23_spill]] %s2424_s1 }
   0x2   :  { %2444 = sst [smem:[#allocation24_spill]] %s2434_s11 }
   0x3   :  { %16 = vsyncpa [#allocation3], 0 }
   0x4   :  { %18 = vsyncpa [#allocation3 + $0x1], 0 }
   0x5   :  { %19 = vsyncpa [#allocation6], 0 }
   0x6   :  { %20 = vsyncpa [#allocation9], 0 }
   0x7   :  { %21 = vsyncpa [#allocation12], 0 }
   0x8   :  { %22 = vsyncpa [#allocation4], 0 }
   0x9   :  { %24 = vsyncpa [#allocation4 + $0x1], 0  ;;  %s2093_s17 = smov 0   ;;  %s2095_s18 = smov 0  }
   0xa   :  { %s2097_s19 = smov 0   ;;  %s2099_s20 = smov 0  }
   0xb LB: > { %2445 = sst [smem:[#allocation19_spill]] %s2003_s17  ;;  %s2114_s21 = sadd.s32 4294967295, %s2015_s20   ;;  %s2015_s20 = sphi %s2099_s20, %s2470_s20   ;;  %s2011_s19 = sphi %s2097_s19, %s2474_s19   ;;  %s2007_s18 = sphi %s2095_s18, %s2473_s18   ;;  %s2003_s17 = sphi %s2093_s17, %s2472_s17  }
   0xc   : > { %s1497_s22 = sadd.s32 4294967294, %s2015_s20   ;;  %s2118_s23 = sadd.s32 1, %s2015_s20  }
   0xd   : > { %2446 = sst [smem:[#allocation20_spill]] %s2118_s23  ;;  %s37_s24 = sadd.s32 1, %s2011_s19 }
   0xe   : > { %s34_s25 = ssub.s32 %s2015_s20, %s2118_s23  ;;  %p44_p0 = scmp.ne.s32.totalorder %s2011_s19, %s2007_s18 }
   0xf   : > { %p35_p1 = scmp.eq.s32.totalorder %s34_s25, 0  ;;  %p45_p2 = scmp.eq.s32.totalorder %s2015_s20, 0 }
  0x10   : > { %p50_p3 = scmp.ne.s32.totalorder %s2007_s18, %s2003_s17  ;;  %p2435_p4 = scmp.eq.s32.totalorder %s2114_s21, 0 }
  0x11   : > { %s2130_s26 = scalar_select %p35_p1, %s2011_s19, %s37_s24  }
  0x12   : > { %p2132_p5 = por %p45_p2, %p44_p0  ;;  %p2138_p6 = por %p2435_p4, %p50_p3 }
  0x13   : > { %2447 = sst [smem:[#allocation21_spill]] %s2130_s26  ;;  %p284_p7 = scmp.eq.s32.totalorder %s2114_s21, 1 }
  0x14   : > { %s2449_s28 = scalar_select %p2138_p6, 1, 0 }
  0x15   : > { %p290_p8 = scmp.eq.s32.totalorder %s1497_s22, 1  ;;  %p1498_p9 = scmp.ge.s32.totalorder %s2015_s20, 1 }
  0x16   : > { %p297_p10 = scmp.lt.s32.totalorder %s2015_s20, 3  ;;  %p2145_p11 = por %p284_p7, %p44_p0 }
  0x17   : > { %p2149_p12 = por %p290_p8, %p50_p3  ;;  %s2017_s13 = smov [#allocation5]  }
  0x18   : > { %s2450_s29 = scalar_select %p2145_p11, 1, 0 }
  0x19   : > { %s2451_s30 = scalar_select %p2149_p12, 1, 0 }
  0x1a   : > { %p2153_p13 = pnand %p1498_p9, %p297_p10  ;;  %s309_s14 = sshll.u32 %s2017_s13, 4  ;;  %s310_s14 = int_to_ptr.vmem [resolvable:$true] %s309_s14 }
  0x1b   : > { %2452 = sst [smem:[#allocation22_spill]] %s2451_s30  ;;  %s2018_s16 = smov [#allocation8]  }
  0x1c   : > { %s2453_s12 = scalar_select %p2153_p13, 1, 0 }
  0x1d   : > { %p1706_p1 = pneg %p2153_p13  ;;  %s341_s22 = sshll.u32 %s2018_s16, 4  ;;  %s342_s22 = int_to_ptr.vmem [resolvable:$true] %s341_s22 }
  0x1e   : > { %s1794_s25 = scalar_lea.vmem %s310_s14, 16384  ;;  %p1802_p9 = scmp.lt.s32.totalorder %s310_s14, %s310_s14 }
  0x1f   : > { %p2161_p2 = pnand %p1706_p1, %p2435_p4  ;;  %p1795_p3 = scmp.ne.s32.totalorder %s310_s14, %s1794_s25 }
  0x20   : > { %p1803_p10 = scmp.lt.s32.totalorder %s1794_s25, %s1794_s25 }
  0x21   : > { %p2167_p0 = pneg %p2161_p2 }
  0x22   : > { %p1804_p1 = por %p1803_p10, %p1802_p9 }
  0x23   : > { %p1797_p7 = pnand %p1795_p3, %p2167_p0 }
  0x25   : > { %p1798_p8 = pneg %p1797_p7 }
  0x27   : > { %p1805_p4 = pnand %p1804_p1, %p1798_p8 }
  0x29   : > { %1808 = shalt.err (!%p1805_p4)
}
  0x2a   : > { %s2019_s13 = smov 256   ;;  %s2020_s16 = smov 16  }
  0x2b   : > { %s2456_s1 = sld [smem:[#allocation23_spill]]  ;;  %s1820_s30 = scalar_lea.vmem %s342_s22, 4096 }
  0x2c   : > { %p1821_p12 = scmp.ne.s32.totalorder %s342_s22, %s1820_s30  ;;  %p1828_p7 = scmp.lt.s32.totalorder %s342_s22, %s342_s22 }
  0x2d   : > { %p1829_p6 = scmp.lt.s32.totalorder %s1820_s30, %s1820_s30 }
  0x2e   : > { %p1823_p11 = pnand %p1821_p12, %p2167_p0 }
  0x2f   : > { %p1830_p13 = por %p1829_p6, %p1828_p7 }
  0x30   : > { %p1824_p3 = pneg %p1823_p11 }
  0x31   : > { %1709 = dma.hbm_to_vmem [thread:$0]  (!%p2161_p2), %s2456_s1, 16384, %s310_s14, [#allocation6], %s2019_s13, %s2019_s13, %s2020_s16  }
  0x32   : > { %p1831_p9 = pnand %p1830_p13, %p1824_p3 }
  0x34   : > { %1834 = shalt.err (!%p1831_p9)
}
  0x35   : > { %1715 = dma.hbm_to_vmem [thread:$0]  (!%p2161_p2), %s2428_s5, 4096, %s342_s22, [#allocation9], %s2019_s13, %s2019_s13, %s2020_s16  }
  0x36   : > { %s2021_s11 = smov [#allocation7]  }
  0x37   : > { %s325_s23 = sshll.u32 %s2021_s11, 4  ;;  %s326_s23 = int_to_ptr.vmem [resolvable:$true] %s325_s23 }
  0x38   : > { %s1846_s26 = scalar_lea.vmem %s326_s23, 4096  ;;  %p1854_p8 = scmp.lt.s32.totalorder %s326_s23, %s326_s23 }
  0x39   : > { %p1847_p4 = scmp.ne.s32.totalorder %s326_s23, %s1846_s26  ;;  %p1855_p10 = scmp.lt.s32.totalorder %s1846_s26, %s1846_s26 }
  0x3b   : > { %p1849_p12 = pnand %p1847_p4, %p2167_p0  ;;  %p1856_p6 = por %p1855_p10, %p1854_p8 }
  0x3d   : > { %p1850_p11 = pneg %p1849_p12 }
  0x3f   : > { %p1857_p13 = pnand %p1856_p6, %p1850_p11 }
  0x41   : > { %1860 = shalt.err (!%p1857_p13)
}
  0x42   : > { %s2022_s30 = smov 128   ;;  %s2023_s14 = smov 8  }
  0x43   : > { %1712 = dma.hbm_to_vmem [thread:$0]  (!%p2161_p2), %s2426_s3, 4096, %s326_s23, [#allocation6], %s2022_s30, %s2022_s30, %s2023_s14  }
  0x44   : > { %s2024_s22 = smov [#allocation10]   ;;  %s2025_s16 = smov [#allocation11]  }
  0x45   : > { %s357_s13 = sshll.u32 %s2024_s22, 4  ;;  %s373_s25 = sshll.u32 %s2025_s16, 4  ;;  %s358_s13 = int_to_ptr.vmem [resolvable:$true] %s357_s13  ;;  %s374_s25 = int_to_ptr.vmem [resolvable:$true] %s373_s25 }
  0x46   : > { %s1872_s26 = scalar_lea.vmem %s358_s13, 4096  ;;  %p1880_p9 = scmp.lt.s32.totalorder %s358_s13, %s358_s13 }
  0x47   : > { %p1873_p1 = scmp.ne.s32.totalorder %s358_s13, %s1872_s26  ;;  %p1881_p4 = scmp.lt.s32.totalorder %s1872_s26, %s1872_s26 }
  0x49   : > { %p1875_p3 = pnand %p1873_p1, %p2167_p0  ;;  %p1882_p12 = por %p1881_p4, %p1880_p9 }
  0x4b   : > { %p1876_p7 = pneg %p1875_p3 }
  0x4d   : > { %p1883_p11 = pnand %p1882_p12, %p1876_p7 }
  0x4f   : > { %1886 = shalt.err (!%p1883_p11)
}
  0x50   : > { %1718 = dma.hbm_to_vmem [thread:$0]  (!%p2161_p2), %s2430_s7, 4096, %s358_s13, [#allocation9], %s2022_s30, %s2022_s30, %s2023_s14  }
  0x51   : > { %s1898_s17 = scalar_lea.vmem %s374_s25, 2048  ;;  %p1906_p13 = scmp.lt.s32.totalorder %s374_s25, %s374_s25 }
  0x52   : > { %p1899_p8 = scmp.ne.s32.totalorder %s374_s25, %s1898_s17  ;;  %p1907_p1 = scmp.lt.s32.totalorder %s1898_s17, %s1898_s17 }
  0x54   : > { %p1901_p10 = pnand %p1899_p8, %p2167_p0  ;;  %p1908_p3 = por %p1907_p1, %p1906_p13 }
  0x56   : > { %p1902_p6 = pneg %p1901_p10 }
  0x58   : > { %p1909_p7 = pnand %p1908_p3, %p1902_p6 }
  0x5a   : > { %1912 = shalt.err (!%p1909_p7)
}
  0x5b   : > { %1721 = dma.hbm_to_vmem [thread:$0]  (!%p2161_p2), %s2432_s9, 2048, %s374_s25, [#allocation12], %s2022_s30, %s2022_s30, %s2023_s14  }
  0x5c   : > { %p1504_p9 = scmp.ge.s32.totalorder %s2015_s20, 2 }
  0x5e   : > { %386 = sbr.rel (%p1504_p9) target bundleno = 131 (0x83), region = 56 }
  0x63   : > { %389 = sbr.rel (!%p2132_p5) target bundleno = 131 (0x83), region = 60  ;;  %s390_s24 = sand.u32 (%p2132_p5), 1, %s2011_s19  }
  0x64   : > { %s1506_s13 = sshll.u32 (%p2132_p5), %s2015_s20, 2  ;;  %s1505_s15 = sshll.u32 (%p2132_p5), %s390_s24, 7 }
  0x65   : > { %s396_s26 = ssub.s32 (%p2132_p5), 7, %s1506_s13  ;;  %s2225_s14 = scalar_lea.sflag (%p2132_p5), [#allocation3], %s390_s24 }
  0x66   : > { %p397_p0 = scmp.lt.s32.totalorder (%p2132_p5), %s396_s26, 4  ;;  %s394_s25 = scalar_lea.vmem (%p2132_p5), [#allocation2], %s1505_s15 }
  0x68   : > { %s2476_s26 = smov (!%p397_p0, %s396_s26), 4 }
  0x69   : > { %s2222_s23 = sshll.u32 %s2476_s26, 9 }
  0x6a   : > { %s402_s30 = ssub.s32 2048, %s2222_s23 }
  0x6b   : > { %403 = vsyncadd %s2225_s14, %s402_s30  ;;  %p1509_p5 = scmp.ne.s32.totalorder %s2222_s23, 0  ;;  %s1536_s27 = sshll.u32 %s2015_s20, 11 }
  0x6c   : > { %s2233_s22 = scalar_lea.hbm %s2423_s0, %s1536_s27  ;;  %s409_s16 = sshll.u32 %s394_s25, 4  ;;  %s2235_s16 = int_to_ptr.vmem [resolvable:$true] %s409_s16 }
  0x6d   : > { %s1913_s24 = scalar_lea.hbm %s2233_s22, %s2222_s23  ;;  %s1917_s26 = scalar_lea.hbm %s2423_s0, 3584 }
  0x6e   : > { %p1914_p2 = scmp.ne.s32.totalorder %s2233_s22, %s1913_s24  ;;  %p1918_p11 = scmp.lt.s32.totalorder %s2233_s22, %s2423_s0 }
  0x6f   : > { %p1919_p8 = scmp.lt.s32.totalorder %s1917_s26, %s1913_s24 }
  0x70   : > { %p1915_p4 = pnand %p1914_p2, %p1509_p5 }
  0x71   : > { %p1920_p10 = por %p1919_p8, %p1918_p11 }
  0x72   : > { %p1916_p12 = pneg %p1915_p4 }
  0x74   : > { %p1921_p6 = pnand %p1920_p10, %p1916_p12 }
  0x76   : > { %1924 = shalt.err (!%p1921_p6)
}
  0x77   : > { %s1925_s25 = scalar_lea.vmem %s2235_s16, %s2222_s23  ;;  %s2026_s27 = smov [#allocation2]  }
  0x78   : > { %p1926_p13 = scmp.ne.s32.totalorder %s2235_s16, %s1925_s25  ;;  %s1929_s11 = sshll.u32 %s2026_s27, 4  ;;  %s1930_s11 = int_to_ptr.vmem [resolvable:$false] %s1929_s11 }
  0x79   : > { %s1931_s17 = scalar_lea.vmem %s1930_s11, 4096  ;;  %p1932_p7 = scmp.lt.s32.totalorder %s2235_s16, %s1930_s11 }
  0x7a   : > { %p1927_p1 = pnand %p1926_p13, %p1509_p5  ;;  %p1933_p0 = scmp.lt.s32.totalorder %s1931_s17, %s1925_s25 }
  0x7c   : > { %p1928_p3 = pneg %p1927_p1  ;;  %p1934_p2 = por %p1933_p0, %p1932_p7 }
  0x7e   : > { %p1935_p4 = pnand %p1934_p2, %p1928_p3 }
  0x80   : > { %1938 = shalt.err (!%p1935_p4)
}
  0x81   : > { %s2027_s1 = smov 512   ;;  %s2028_s24 = smov 32  }
  0x82   : > { %415 = dma.hbm_to_vmem [thread:$0]  (%p1509_p5), %s2233_s22, %s2222_s23, %s2235_s16, %s2225_s14, %s2027_s1, %s2027_s1, %s2028_s24  }
  0x83 PF: > { %p2457_p12 = scmp.ne.s32.totalorder %s2453_s12, 0 }
  0x84   : > { %s2264_s13 = sand.u32 (!%p2457_p12), 1, %s2007_s18   ;;  %p2458_p11 = scmp.ne.s32.totalorder (!%p2457_p12), %s2449_s28, 0 }
  0x85   : > { %421 = sbr.rel (%p2457_p12) target bundleno = 1260 (0x4ec), region = 64  ;;  %s1515_s15 = sshll.u32 (!%p2457_p12), %s2264_s13, 7 }
  0x86   : > { %s424_s26 = scalar_lea.sflag (!%p2457_p12), [#allocation3], %s2264_s13  ;;  %s2268_s30 = scalar_lea.vmem (!%p2457_p12), [#allocation2], %s1515_s15 }
  0x8a   : > { %1982 = dma.done.wait (%p2458_p11), %s424_s26, 2048  }
  0x8b   : > { %1984 = vsyncadd (%p2458_p11), %s424_s26, 4294965248  ;;  %p2459_p5 = scmp.eq.s32.totalorder %s2114_s21, 0 }
  0x8d   : > { %1986 = dma.done.wait (%p2459_p5), [#allocation6], 20480   ;;  %p2460_p8 = pmov %p2459_p5 }
  0x8e   : > { %p2461_p10 = pmov %p2459_p5 }
  0x8f   : > { %1988 = vsyncadd (%p2460_p8), [#allocation6], 4294946816 }
  0x90   : > { %1990 = dma.done.wait (%p2461_p10), [#allocation9], 8192   ;;  %p2462_p6 = pmov %p2459_p5 }
  0x91   : > { %p2463_p13 = pmov %p2459_p5 }
  0x92   : > { %1992 = vsyncadd (%p2462_p6), [#allocation9], 4294959104 }
  0x93   : > { %1994 = dma.done.wait (%p2463_p13), [#allocation12], 2048   ;;  %p2464_p1 = pmov %p2459_p5 }
  0x94   : > { %v544_v0 = vld [vmem:[#allocation5 + $0xf8] sm:$0xff]  ;;  %v543_v2 = vld [vmem:[#allocation5 + $0xf0] sm:$0xff]  ;;  %v542_v4 = vld [vmem:[#allocation5 + $0xe8] sm:$0xff]  ;;  %s1521_s1 = sshll.u32 %s2264_s13, 5  ;;  %s1357_s15 = scalar_lea.sflag [#allocation4], %s2264_s13 }
  0x95   : > { %1996 = vsyncadd (%p2464_p1), [#allocation12], 4294965248  ;;  %v608_v1 = vld [vmem:[#allocation5 + $0x2f8] sm:$0xff]  ;;  %653 = vmatprep.subr.mxu0 %v544_v0  ;;  %v607_v3 = vld [vmem:[#allocation5 + $0x2f0] sm:$0xff]  ;;  %s485_s24 = scalar_lea.vmem [#allocation13], %s1521_s1  ;;  %p2465_p3 = scmp.ne.s32.totalorder %s2450_s29, 0 }
  0x96   : > { %742 = vmatprep.subr.mxu1 %v608_v1  ;;  %v606_v5 = vld [vmem:[#allocation5 + $0x2e8] sm:$0xff]  ;;  %654 = vmatpush1.msra.mxu0 %v543_v2  ;;  %v541_v6 = vld [vmem:[#allocation5 + $0xe0] sm:$0xff]  ;;  %v540_v8 = vld [vmem:[#allocation5 + $0xd8] sm:$0xff]  ;;  %s1526_s26 = sshll.u32 (%p2465_p3), %s2114_s21, 2 }
  0x97   : > { %743 = vmatpush1.msra.mxu1 %v607_v3  ;;  %v605_v7 = vld [vmem:[#allocation5 + $0x2e0] sm:$0xff]  ;;  %655 = vmatprep.subr.mxu0 %v542_v4  ;;  %v604_v9 = vld [vmem:[#allocation5 + $0x2d8] sm:$0xff]  ;;  %v539_v10 = vld [vmem:[#allocation5 + $0xd0] sm:$0xff] }
  0x98   : > { %744 = vmatprep.subr.mxu1 %v606_v5  ;;  %v603_v11 = vld [vmem:[#allocation5 + $0x2d0] sm:$0xff]  ;;  %656 = vmatpush1.msra.mxu0 %v541_v6  ;;  %v538_v12 = vld [vmem:[#allocation5 + $0xc8] sm:$0xff]  ;;  %v537_v14 = vld [vmem:[#allocation5 + $0xc0] sm:$0xff] }
  0x99   : > { %745 = vmatpush1.msra.mxu1 %v605_v7  ;;  %v602_v13 = vld [vmem:[#allocation5 + $0x2c8] sm:$0xff]  ;;  %657 = vmatprep.subr.mxu0 %v540_v8  ;;  %v601_v15 = vld [vmem:[#allocation5 + $0x2c0] sm:$0xff]  ;;  %v536_v16 = vld [vmem:[#allocation5 + $0xb8] sm:$0xff] }
  0x9a   : > { %746 = vmatprep.subr.mxu1 %v604_v9  ;;  %658 = vmatpush1.msra.mxu0 %v539_v10  ;;  %v600_v17 = vld [vmem:[#allocation5 + $0x2b8] sm:$0xff]  ;;  %v535_v18 = vld [vmem:[#allocation5 + $0xb0] sm:$0xff]  ;;  %v534_v20 = vld [vmem:[#allocation5 + $0xa8] sm:$0xff] }
  0x9b   : > { %747 = vmatpush1.msra.mxu1 %v603_v11  ;;  %659 = vmatprep.subr.mxu0 %v538_v12  ;;  %v599_v19 = vld [vmem:[#allocation5 + $0x2b0] sm:$0xff]  ;;  %v598_v21 = vld [vmem:[#allocation5 + $0x2a8] sm:$0xff]  ;;  %v533_v22 = vld [vmem:[#allocation5 + $0xa0] sm:$0xff] }
  0x9c   : > { %748 = vmatprep.subr.mxu1 %v602_v13  ;;  %660 = vmatpush1.msra.mxu0 %v537_v14  ;;  %v597_v23 = vld [vmem:[#allocation5 + $0x2a0] sm:$0xff]  ;;  %v532_v24 = vld [vmem:[#allocation5 + $0x98] sm:$0xff]  ;;  %v531_v26 = vld [vmem:[#allocation5 + $0x90] sm:$0xff] }
  0x9d   : > { %749 = vmatpush1.msra.mxu1 %v601_v15  ;;  %661 = vmatprep.subr.mxu0 %v536_v16  ;;  %v596_v25 = vld [vmem:[#allocation5 + $0x298] sm:$0xff]  ;;  %v595_v27 = vld [vmem:[#allocation5 + $0x290] sm:$0xff]  ;;  %v530_v28 = vld [vmem:[#allocation5 + $0x88] sm:$0xff] }
  0x9e   : > { %750 = vmatprep.subr.mxu1 %v600_v17  ;;  %662 = vmatpush1.msra.mxu0 %v535_v18  ;;  %v594_v29 = vld [vmem:[#allocation5 + $0x288] sm:$0xff]  ;;  %v529_v30 = vld [vmem:[#allocation5 + $0x80] sm:$0xff]  ;;  %v528_v32 = vld [vmem:[#allocation5 + $0x78] sm:$0xff] }
  0x9f   : > { %751 = vmatpush1.msra.mxu1 %v599_v19  ;;  %663 = vmatprep.subr.mxu0 %v534_v20  ;;  %v593_v31 = vld [vmem:[#allocation5 + $0x280] sm:$0xff]  ;;  %v592_v33 = vld [vmem:[#allocation5 + $0x278] sm:$0xff]  ;;  %v527_v34 = vld [vmem:[#allocation5 + $0x70] sm:$0xff] }
  0xa0   : > { %752 = vmatprep.subr.mxu1 %v598_v21  ;;  %664 = vmatpush1.msra.mxu0 %v533_v22  ;;  %v591_v35 = vld [vmem:[#allocation5 + $0x270] sm:$0xff]  ;;  %v526_v36 = vld [vmem:[#allocation5 + $0x68] sm:$0xff]  ;;  %v525_v38 = vld [vmem:[#allocation5 + $0x60] sm:$0xff] }
  0xa1   : > { %753 = vmatpush1.msra.mxu1 %v597_v23  ;;  %665 = vmatprep.subr.mxu0 %v532_v24  ;;  %v590_v37 = vld [vmem:[#allocation5 + $0x268] sm:$0xff]  ;;  %v589_v39 = vld [vmem:[#allocation5 + $0x260] sm:$0xff]  ;;  %v524_v40 = vld [vmem:[#allocation5 + $0x58] sm:$0xff] }
  0xa2   : > { %754 = vmatprep.subr.mxu1 %v596_v25  ;;  %666 = vmatpush1.msra.mxu0 %v531_v26  ;;  %v588_v41 = vld [vmem:[#allocation5 + $0x258] sm:$0xff]  ;;  %v523_v42 = vld [vmem:[#allocation5 + $0x50] sm:$0xff]  ;;  %v522_v44 = vld [vmem:[#allocation5 + $0x48] sm:$0xff] }
  0xa3   : > { %755 = vmatpush1.msra.mxu1 %v595_v27  ;;  %667 = vmatprep.subr.mxu0 %v530_v28  ;;  %v587_v43 = vld [vmem:[#allocation5 + $0x250] sm:$0xff]  ;;  %v586_v45 = vld [vmem:[#allocation5 + $0x248] sm:$0xff]  ;;  %v521_v46 = vld [vmem:[#allocation5 + $0x40] sm:$0xff] }
  0xa4   : > { %756 = vmatprep.subr.mxu1 %v594_v29  ;;  %668 = vmatpush1.msra.mxu0 %v529_v30  ;;  %v585_v47 = vld [vmem:[#allocation5 + $0x240] sm:$0xff]  ;;  %v520_v48 = vld [vmem:[#allocation5 + $0x38] sm:$0xff]  ;;  %v519_v50 = vld [vmem:[#allocation5 + $0x30] sm:$0xff] }
  0xa5   : > { %757 = vmatpush1.msra.mxu1 %v593_v31  ;;  %669 = vmatprep.subr.mxu0 %v528_v32  ;;  %v584_v49 = vld [vmem:[#allocation5 + $0x238] sm:$0xff]  ;;  %v583_v51 = vld [vmem:[#allocation5 + $0x230] sm:$0xff]  ;;  %v518_v52 = vld [vmem:[#allocation5 + $0x28] sm:$0xff] }
  0xa6   : > { %758 = vmatprep.subr.mxu1 %v592_v33  ;;  %670 = vmatpush1.msra.mxu0 %v527_v34  ;;  %v582_v53 = vld [vmem:[#allocation5 + $0x228] sm:$0xff]  ;;  %v517_v54 = vld [vmem:[#allocation5 + $0x20] sm:$0xff]  ;;  %v516_v56 = vld [vmem:[#allocation5 + $0x18] sm:$0xff] }
  0xa7   : > { %759 = vmatpush1.msra.mxu1 %v591_v35  ;;  %671 = vmatprep.subr.mxu0 %v526_v36  ;;  %v581_v55 = vld [vmem:[#allocation5 + $0x220] sm:$0xff]  ;;  %v580_v57 = vld [vmem:[#allocation5 + $0x218] sm:$0xff]  ;;  %v515_v58 = vld [vmem:[#allocation5 + $0x10] sm:$0xff] }
  0xa8   : > { %760 = vmatprep.subr.mxu1 %v590_v37  ;;  %672 = vmatpush1.msra.mxu0 %v525_v38  ;;  %v579_v59 = vld [vmem:[#allocation5 + $0x210] sm:$0xff]  ;;  %v514_v60 = vld [vmem:[#allocation5 + $0x8] sm:$0xff]  ;;  %v513_v62 = vld [vmem:[#allocation5] sm:$0xff] }
  0xa9   : > { %761 = vmatpush1.msra.mxu1 %v589_v39  ;;  %673 = vmatprep.subr.mxu0 %v524_v40  ;;  %v578_v61 = vld [vmem:[#allocation5 + $0x208] sm:$0xff]  ;;  %v577_v63 = vld [vmem:[#allocation5 + $0x200] sm:$0xff]  ;;  %v576_v0 = vld [vmem:[#allocation5 + $0x1f8] sm:$0xff] }
  0xaa   : > { %762 = vmatprep.subr.mxu1 %v588_v41  ;;  %674 = vmatpush1.msra.mxu0 %v523_v42  ;;  %v640_v1 = vld [vmem:[#allocation5 + $0x3f8] sm:$0xff]  ;;  %v575_v2 = vld [vmem:[#allocation5 + $0x1f0] sm:$0xff]  ;;  %v574_v4 = vld [vmem:[#allocation5 + $0x1e8] sm:$0xff] }
  0xab   : > { %763 = vmatpush1.msra.mxu1 %v587_v43  ;;  %675 = vmatprep.subr.mxu0 %v522_v44  ;;  %v639_v3 = vld [vmem:[#allocation5 + $0x3f0] sm:$0xff]  ;;  %v638_v5 = vld [vmem:[#allocation5 + $0x3e8] sm:$0xff]  ;;  %v573_v6 = vld [vmem:[#allocation5 + $0x1e0] sm:$0xff] }
  0xac   : > { %764 = vmatprep.subr.mxu1 %v586_v45  ;;  %676 = vmatpush1.msra.mxu0 %v521_v46  ;;  %v637_v7 = vld [vmem:[#allocation5 + $0x3e0] sm:$0xff]  ;;  %v572_v8 = vld [vmem:[#allocation5 + $0x1d8] sm:$0xff]  ;;  %v571_v10 = vld [vmem:[#allocation5 + $0x1d0] sm:$0xff] }
  0xad   : > { %765 = vmatpush1.msra.mxu1 %v585_v47  ;;  %677 = vmatprep.subr.mxu0 %v520_v48  ;;  %v636_v9 = vld [vmem:[#allocation5 + $0x3d8] sm:$0xff]  ;;  %v635_v11 = vld [vmem:[#allocation5 + $0x3d0] sm:$0xff]  ;;  %v570_v12 = vld [vmem:[#allocation5 + $0x1c8] sm:$0xff] }
  0xae   : > { %766 = vmatprep.subr.mxu1 %v584_v49  ;;  %678 = vmatpush1.msra.mxu0 %v519_v50  ;;  %v634_v13 = vld [vmem:[#allocation5 + $0x3c8] sm:$0xff]  ;;  %v569_v14 = vld [vmem:[#allocation5 + $0x1c0] sm:$0xff]  ;;  %v568_v16 = vld [vmem:[#allocation5 + $0x1b8] sm:$0xff] }
  0xaf   : > { %767 = vmatpush1.msra.mxu1 %v583_v51  ;;  %679 = vmatprep.subr.mxu0 %v518_v52  ;;  %v633_v15 = vld [vmem:[#allocation5 + $0x3c0] sm:$0xff]  ;;  %v632_v17 = vld [vmem:[#allocation5 + $0x3b8] sm:$0xff]  ;;  %v567_v18 = vld [vmem:[#allocation5 + $0x1b0] sm:$0xff] }
  0xb0   : > { %768 = vmatprep.subr.mxu1 %v582_v53  ;;  %680 = vmatpush1.msra.mxu0 %v517_v54  ;;  %v631_v19 = vld [vmem:[#allocation5 + $0x3b0] sm:$0xff]  ;;  %v566_v20 = vld [vmem:[#allocation5 + $0x1a8] sm:$0xff]  ;;  %v565_v22 = vld [vmem:[#allocation5 + $0x1a0] sm:$0xff] }
  0xb1   : > { %769 = vmatpush1.msra.mxu1 %v581_v55  ;;  %681 = vmatprep.subr.mxu0 %v516_v56  ;;  %v630_v21 = vld [vmem:[#allocation5 + $0x3a8] sm:$0xff]  ;;  %v629_v23 = vld [vmem:[#allocation5 + $0x3a0] sm:$0xff]  ;;  %v564_v24 = vld [vmem:[#allocation5 + $0x198] sm:$0xff] }
  0xb2   : > { %770 = vmatprep.subr.mxu1 %v580_v57  ;;  %682 = vmatpush1.msra.mxu0 %v515_v58  ;;  %v628_v25 = vld [vmem:[#allocation5 + $0x398] sm:$0xff]  ;;  %v563_v26 = vld [vmem:[#allocation5 + $0x190] sm:$0xff]  ;;  %v562_v28 = vld [vmem:[#allocation5 + $0x188] sm:$0xff] }
  0xb3   : > { %771 = vmatpush1.msra.mxu1 %v579_v59  ;;  %683 = vmatprep.subr.mxu0 %v514_v60  ;;  %v627_v27 = vld [vmem:[#allocation5 + $0x390] sm:$0xff]  ;;  %v626_v29 = vld [vmem:[#allocation5 + $0x388] sm:$0xff]  ;;  %v561_v30 = vld [vmem:[#allocation5 + $0x180] sm:$0xff] }
  0xb4   : > { %772 = vmatprep.subr.mxu1 %v578_v61  ;;  %684 = vmatpush1.msra.mxu0 %v513_v62  ;;  %v625_v31 = vld [vmem:[#allocation5 + $0x380] sm:$0xff]  ;;  %v560_v32 = vld [vmem:[#allocation5 + $0x178] sm:$0xff]  ;;  %v559_v34 = vld [vmem:[#allocation5 + $0x170] sm:$0xff] }
  0xb5   : > { %773 = vmatpush1.msra.mxu1 %v577_v63  ;;  %685 = vmatprep.subr.mxu0 %v576_v0  ;;  %v624_v33 = vld [vmem:[#allocation5 + $0x378] sm:$0xff]  ;;  %v623_v35 = vld [vmem:[#allocation5 + $0x370] sm:$0xff]  ;;  %v558_v36 = vld [vmem:[#allocation5 + $0x168] sm:$0xff] }
  0xb6   : > { %774 = vmatprep.subr.mxu1 %v640_v1  ;;  %686 = vmatpush2.msra.mxu0 %v575_v2  ;;  %v622_v37 = vld [vmem:[#allocation5 + $0x368] sm:$0xff]  ;;  %v557_v38 = vld [vmem:[#allocation5 + $0x160] sm:$0xff]  ;;  %v556_v40 = vld [vmem:[#allocation5 + $0x158] sm:$0xff] }
  0xb7   : > { %775 = vmatpush2.msra.mxu1 %v639_v3  ;;  %687 = vmatprep.subr.mxu0 %v574_v4  ;;  %v621_v39 = vld [vmem:[#allocation5 + $0x360] sm:$0xff]  ;;  %v620_v41 = vld [vmem:[#allocation5 + $0x358] sm:$0xff]  ;;  %v555_v42 = vld [vmem:[#allocation5 + $0x150] sm:$0xff] }
  0xb8   : > { %776 = vmatprep.subr.mxu1 %v638_v5  ;;  %688 = vmatpush2.msra.mxu0 %v573_v6  ;;  %v619_v43 = vld [vmem:[#allocation5 + $0x350] sm:$0xff]  ;;  %v554_v44 = vld [vmem:[#allocation5 + $0x148] sm:$0xff]  ;;  %v553_v46 = vld [vmem:[#allocation5 + $0x140] sm:$0xff] }
  0xb9   : > { %777 = vmatpush2.msra.mxu1 %v637_v7  ;;  %689 = vmatprep.subr.mxu0 %v572_v8  ;;  %v618_v45 = vld [vmem:[#allocation5 + $0x348] sm:$0xff]  ;;  %v617_v47 = vld [vmem:[#allocation5 + $0x340] sm:$0xff]  ;;  %v552_v48 = vld [vmem:[#allocation5 + $0x138] sm:$0xff] }
  0xba   : > { %778 = vmatprep.subr.mxu1 %v636_v9  ;;  %690 = vmatpush2.msra.mxu0 %v571_v10  ;;  %v616_v49 = vld [vmem:[#allocation5 + $0x338] sm:$0xff]  ;;  %v551_v50 = vld [vmem:[#allocation5 + $0x130] sm:$0xff]  ;;  %v550_v52 = vld [vmem:[#allocation5 + $0x128] sm:$0xff] }
  0xbb   : > { %779 = vmatpush2.msra.mxu1 %v635_v11  ;;  %691 = vmatprep.subr.mxu0 %v570_v12  ;;  %v615_v51 = vld [vmem:[#allocation5 + $0x330] sm:$0xff]  ;;  %v614_v53 = vld [vmem:[#allocation5 + $0x328] sm:$0xff]  ;;  %v549_v54 = vld [vmem:[#allocation5 + $0x120] sm:$0xff] }
  0xbc   : > { %780 = vmatprep.subr.mxu1 %v634_v13  ;;  %692 = vmatpush2.msra.mxu0 %v569_v14  ;;  %v613_v55 = vld [vmem:[#allocation5 + $0x320] sm:$0xff]  ;;  %v548_v56 = vld [vmem:[#allocation5 + $0x118] sm:$0xff]  ;;  %v547_v58 = vld [vmem:[#allocation5 + $0x110] sm:$0xff] }
  0xbd   : > { %781 = vmatpush2.msra.mxu1 %v633_v15  ;;  %693 = vmatprep.subr.mxu0 %v568_v16  ;;  %v612_v57 = vld [vmem:[#allocation5 + $0x318] sm:$0xff]  ;;  %v611_v59 = vld [vmem:[#allocation5 + $0x310] sm:$0xff]  ;;  %v546_v60 = vld [vmem:[#allocation5 + $0x108] sm:$0xff] }
  0xbe   : > { %782 = vmatprep.subr.mxu1 %v632_v17  ;;  %694 = vmatpush2.msra.mxu0 %v567_v18  ;;  %v610_v61 = vld [vmem:[#allocation5 + $0x308] sm:$0xff]  ;;  %v545_v62 = vld [vmem:[#allocation5 + $0x100] sm:$0xff]  ;;  %v500_v1 = vld [vmem:[%s2268_s30 + $0x18] sm:$0xff] }
  0xbf   : > { %783 = vmatpush2.msra.mxu1 %v631_v19  ;;  %695 = vmatprep.subr.mxu0 %v566_v20  ;;  %v498_v63 = vld [vmem:[%s2268_s30 + $0x8] sm:$0xff]  ;;  %v609_v0 = vld [vmem:[#allocation5 + $0x300] sm:$0xff]  ;;  %v499_v3 = vld [vmem:[%s2268_s30 + $0x10] sm:$0xff] }
  0xc0   : > { %784 = vmatprep.subr.mxu1 %v630_v21  ;;  %696 = vmatpush2.msra.mxu0 %v565_v22  ;;  %v497_v2 = vld [vmem:[%s2268_s30] sm:$0xff]  ;;  %v502_v4 = vld [vmem:[%s2268_s30 + $0x28] sm:$0xff]  ;;  %v504_v5 = vld [vmem:[%s2268_s30 + $0x38] sm:$0xff] }
  0xc1   : > { %785 = vmatpush2.msra.mxu1 %v629_v23  ;;  %697 = vmatprep.subr.mxu0 %v564_v24  ;;  %v870_v6 = vld [vmem:[#allocation7 + $0xf8] sm:$0xff]  ;;  %v501_v8 = vld [vmem:[%s2268_s30 + $0x20] sm:$0xff]  ;;  %v503_v9 = vld [vmem:[%s2268_s30 + $0x30] sm:$0xff] }
  0xc2   : > { %786 = vmatprep.subr.mxu1 %v628_v25  ;;  %698 = vmatpush2.msra.mxu0 %v563_v26  ;;  %v854_v7 = vld [vmem:[#allocation7 + $0x78] sm:$0xff]  ;;  %v506_v10 = vld [vmem:[%s2268_s30 + $0x48] sm:$0xff]  ;;  %v869_v12 = vld [vmem:[#allocation7 + $0xf0] sm:$0xff] }
  0xc3   : > { %787 = vmatpush2.msra.mxu1 %v627_v27  ;;  %699 = vmatprep.subr.mxu0 %v562_v28  ;;  %v508_v11 = vld [vmem:[%s2268_s30 + $0x58] sm:$0xff]  ;;  %v853_v13 = vld [vmem:[#allocation7 + $0x70] sm:$0xff]  ;;  %v505_v14 = vld [vmem:[%s2268_s30 + $0x40] sm:$0xff] }
  0xc4   : > { %788 = vmatprep.subr.mxu1 %v626_v29  ;;  %700 = vmatpush2.msra.mxu0 %v561_v30  ;;  %v507_v15 = vld [vmem:[%s2268_s30 + $0x50] sm:$0xff]  ;;  %v510_v16 = vld [vmem:[%s2268_s30 + $0x68] sm:$0xff]  ;;  %v512_v17 = vld [vmem:[%s2268_s30 + $0x78] sm:$0xff] }
  0xc5   : > { %789 = vmatpush2.msra.mxu1 %v625_v31  ;;  %701 = vmatprep.subr.mxu0 %v560_v32  ;;  %v868_v18 = vld [vmem:[#allocation7 + $0xe8] sm:$0xff]  ;;  %v509_v20 = vld [vmem:[%s2268_s30 + $0x60] sm:$0xff]  ;;  %v511_v21 = vld [vmem:[%s2268_s30 + $0x70] sm:$0xff]  ;;  %s1365_s30 = ssub.s32 (%p2465_p3), 7, %s1526_s26 }
  0xc6   : > { %790 = vmatprep.subr.mxu1 %v624_v33  ;;  %702 = vmatpush2.msra.mxu0 %v559_v34  ;;  %v852_v19 = vld [vmem:[#allocation7 + $0x68] sm:$0xff]  ;;  %v867_v22 = vld [vmem:[#allocation7 + $0xe0] sm:$0xff]  ;;  %v866_v24 = vld [vmem:[#allocation7 + $0xd8] sm:$0xff]  ;;  %p1366_p7 = scmp.lt.s32.totalorder (%p2465_p3), %s1365_s30, 4 }
  0xc7   : > { %791 = vmatpush2.msra.mxu1 %v623_v35  ;;  %703 = vmatprep.subr.mxu0 %v558_v36  ;;  %v851_v23 = vld [vmem:[#allocation7 + $0x60] sm:$0xff]  ;;  %v850_v25 = vld [vmem:[#allocation7 + $0x58] sm:$0xff]  ;;  %v865_v26 = vld [vmem:[#allocation7 + $0xd0] sm:$0xff] }
  0xc8   : > { %792 = vmatprep.subr.mxu1 %v622_v37  ;;  %704 = vmatpush2.msra.mxu0 %v557_v38  ;;  %v849_v27 = vld [vmem:[#allocation7 + $0x50] sm:$0xff]  ;;  %v864_v28 = vld [vmem:[#allocation7 + $0xc8] sm:$0xff]  ;;  %v863_v30 = vld [vmem:[#allocation7 + $0xc0] sm:$0xff] }
  0xc9   : > { %793 = vmatpush2.msra.mxu1 %v621_v39  ;;  %705 = vmatprep.subr.mxu0 %v556_v40  ;;  %v848_v29 = vld [vmem:[#allocation7 + $0x48] sm:$0xff]  ;;  %v847_v31 = vld [vmem:[#allocation7 + $0x40] sm:$0xff]  ;;  %v862_v32 = vld [vmem:[#allocation7 + $0xb8] sm:$0xff] }
  0xca   : > { %794 = vmatprep.subr.mxu1 %v620_v41  ;;  %706 = vmatpush2.msra.mxu0 %v555_v42  ;;  %v846_v33 = vld [vmem:[#allocation7 + $0x38] sm:$0xff]  ;;  %v861_v34 = vld [vmem:[#allocation7 + $0xb0] sm:$0xff]  ;;  %v860_v36 = vld [vmem:[#allocation7 + $0xa8] sm:$0xff] }
  0xcb   : > { %795 = vmatpush2.msra.mxu1 %v619_v43  ;;  %707 = vmatprep.subr.mxu0 %v554_v44  ;;  %v845_v35 = vld [vmem:[#allocation7 + $0x30] sm:$0xff]  ;;  %v844_v37 = vld [vmem:[#allocation7 + $0x28] sm:$0xff]  ;;  %v859_v38 = vld [vmem:[#allocation7 + $0xa0] sm:$0xff] }
  0xcc   : > { %796 = vmatprep.subr.mxu1 %v618_v45  ;;  %708 = vmatpush2.msra.mxu0 %v553_v46  ;;  %v843_v39 = vld [vmem:[#allocation7 + $0x20] sm:$0xff]  ;;  %v858_v40 = vld [vmem:[#allocation7 + $0x98] sm:$0xff]  ;;  %v857_v42 = vld [vmem:[#allocation7 + $0x90] sm:$0xff] }
  0xcd   : > { %797 = vmatpush2.msra.mxu1 %v617_v47  ;;  %709 = vmatprep.subr.mxu0 %v552_v48  ;;  %v842_v41 = vld [vmem:[#allocation7 + $0x18] sm:$0xff]  ;;  %v841_v43 = vld [vmem:[#allocation7 + $0x10] sm:$0xff]  ;;  %v856_v44 = vld [vmem:[#allocation7 + $0x88] sm:$0xff] }
  0xce   : > { %798 = vmatprep.subr.mxu1 %v616_v49  ;;  %710 = vmatpush2.msra.mxu0 %v551_v50  ;;  %v840_v45 = vld [vmem:[#allocation7 + $0x8] sm:$0xff]  ;;  %v855_v46 = vld [vmem:[#allocation7 + $0x80] sm:$0xff]  ;;  %v998_v48 = vld [vmem:[#allocation8 + $0xf8] sm:$0xff] }
  0xcf   : > { %799 = vmatpush2.msra.mxu1 %v615_v51  ;;  %711 = vmatprep.subr.mxu0 %v550_v52  ;;  %v839_v47 = vld [vmem:[#allocation7] sm:$0xff]  ;;  %v997_v49 = vld [vmem:[#allocation8 + $0xf0] sm:$0xff]  ;;  %v996_v50 = vld [vmem:[#allocation8 + $0xe8] sm:$0xff] }
  0xd0   : > { %800 = vmatprep.subr.mxu1 %v614_v53  ;;  %712 = vmatpush2.msra.mxu0 %v549_v54  ;;  %v995_v51 = vld [vmem:[#allocation8 + $0xe0] sm:$0xff]  ;;  %v994_v52 = vld [vmem:[#allocation8 + $0xd8] sm:$0xff]  ;;  %v993_v53 = vld [vmem:[#allocation8 + $0xd0] sm:$0xff] }
  0xd1   : > { %801 = vmatpush2.msra.mxu1 %v613_v55  ;;  %713 = vmatprep.subr.mxu0 %v548_v56  ;;  %v992_v54 = vld [vmem:[#allocation8 + $0xc8] sm:$0xff]  ;;  %v991_v55 = vld [vmem:[#allocation8 + $0xc0] sm:$0xff]  ;;  %v990_v56 = vld [vmem:[#allocation8 + $0xb8] sm:$0xff] }
  0xd2   : > { %802 = vmatprep.subr.mxu1 %v612_v57  ;;  %714 = vmatpush2.msra.mxu0 %v547_v58  ;;  %v989_v57 = vld [vmem:[#allocation8 + $0xb0] sm:$0xff]  ;;  %v988_v58 = vld [vmem:[#allocation8 + $0xa8] sm:$0xff] }
  0xd3   : > { %803 = vmatpush2.msra.mxu1 %v611_v59  ;;  %715 = vmatprep.subr.mxu0 %v546_v60  ;;  %v987_v59 = vld [vmem:[#allocation8 + $0xa0] sm:$0xff]  ;;  %v986_v60 = vld [vmem:[#allocation8 + $0x98] sm:$0xff] }
  0xd4   : > { %804 = vmatprep.subr.mxu1 %v610_v61  ;;  %716 = vmatpush2.msra.mxu0 %v545_v62  ;;  %v985_v61 = vld [vmem:[#allocation8 + $0x90] sm:$0xff]  ;;  %v984_v62 = vld [vmem:[#allocation8 + $0x88] sm:$0xff] }
  0xd5   : > { %717 = vmatprep.mubr.f32.mxu0 %v498_v63  ;;  %805 = vmatpush2.msra.mxu1 %v609_v0  ;;  %v983_v63 = vld [vmem:[#allocation8 + $0x80] sm:$0xff]  ;;  %v982_v0 = vld [vmem:[#allocation8 + $0x78] sm:$0xff] }
  0xd6   : > { %806 = vmatprep.mubr.f32.mxu1 %v500_v1  ;;  %718 = vmatmul.mubr.f32.vlgmr.msra.gmra.mxu0 %v497_v2  ;;  %v981_v1 = vld [vmem:[#allocation8 + $0x70] sm:$0xff]  ;;  %v980_v2 = vld [vmem:[#allocation8 + $0x68] sm:$0xff] }
  0xd7   : > { %807 = vmatmul.mubr.f32.vlgmr.msra.gmra.mxu1 %v499_v3  ;;  %723 = vmatprep.mubr.f32.mxu0 %v502_v4  ;;  %v979_v3 = vld [vmem:[#allocation8 + $0x60] sm:$0xff]  ;;  %v978_v4 = vld [vmem:[#allocation8 + $0x58] sm:$0xff] }
  0xd8   : > { %812 = vmatprep.mubr.f32.mxu1 %v504_v5  ;;  %1538 = vmatprep.subr.mxu0 %v870_v6  ;;  %v977_v5 = vld [vmem:[#allocation8 + $0x50] sm:$0xff]  ;;  %v976_v6 = vld [vmem:[#allocation8 + $0x48] sm:$0xff] }
  0xd9   : > { %1539 = vmatpush3.msra.mxu0 %v854_v7  ;;  %1011 = vmatprep.subr.mxu1 %v998_v48  ;;  %v643_v7 = vlaneseq }
  0xda   : > { %724 = vmatmul.mubr.f32.gmra.mxu0 %v501_v8  ;;  %1540 = vmatprep.subr.mxu0 %v869_v12 }
  0xdb   : > { %813 = vmatmul.mubr.f32.gmra.mxu1 %v503_v9  ;;  %729 = vmatprep.mubr.f32.mxu0 %v506_v10  ;;  %v2302_v8 = vshrl.u32 %v643_v7, 7  ;;  %v641_v10 = vld [vmem:[%s2425_s2] sm:$0x3] }
  0xdc   : > { %818 = vmatprep.mubr.f32.mxu1 %v508_v11  ;;  %1541 = vmatpush3.msra.mxu0 %v853_v13  ;;  %v1120_v7 = vld [vmem:[#allocation10 + $0x60] sm:$0xff] }
  0xdd   : > { %1542 = vmatprep.subr.mxu0 %v868_v18  ;;  %1012 = vmatpush1.msra.mxu1 %v997_v49  ;;  %v645_v9 = vsub.s32 0, %v2302_v8  ;;  %v649_v11 = vsub.s32 1, %v2302_v8 }
  0xde   : > { %730 = vmatmul.mubr.f32.gmra.mxu0 %v505_v14  ;;  %1013 = vmatprep.subr.mxu1 %v996_v50 }
  0xdf   : > { %819 = vmatmul.mubr.f32.gmra.mxu1 %v507_v15  ;;  %735 = vmatprep.mubr.f32.mxu0 %v510_v16  ;;  %v646_v12 = vrot.slane %v641_v10, %v645_v9  ;;  %v650_v13 = vrot.slane %v641_v10, %v649_v11  ;;  %v1135_v10 = vld [vmem:[#allocation10 + $0xd8] sm:$0xff] }
  0xe0   : > { %824 = vmatprep.mubr.f32.mxu1 %v512_v17  ;;  %1543 = vmatpush3.msra.mxu0 %v852_v19 }
  0xe1   : > { %1544 = vmatprep.subr.mxu0 %v867_v22  ;;  %1014 = vmatpush1.msra.mxu1 %v995_v51 }
  0xe2   : > { %736 = vmatmul.mubr.f32.gmra.mxu0 %v509_v20  ;;  %1015 = vmatprep.subr.mxu1 %v994_v52 }
  0xe3   : > { %825 = vmatmul.mubr.f32.gmra.mxu1 %v511_v21  ;;  %1545 = vmatpush3.msra.mxu0 %v851_v23 }
  0xe4   : > { %1546 = vmatprep.subr.mxu0 %v866_v24  ;;  %1016 = vmatpush1.msra.mxu1 %v993_v53 }
  0xe5   : > { %1547 = vmatpush3.msra.mxu0 %v850_v25  ;;  %1017 = vmatprep.subr.mxu1 %v992_v54  ;;  %v975_v54 = vld [vmem:[#allocation8 + $0x40] sm:$0xff] }
  0xe6   : > { %1548 = vmatprep.subr.mxu0 %v865_v26  ;;  %1018 = vmatpush1.msra.mxu1 %v991_v55  ;;  %v974_v55 = vld [vmem:[#allocation8 + $0x38] sm:$0xff] }
  0xe7   : > { %1549 = vmatpush3.msra.mxu0 %v849_v27  ;;  %1019 = vmatprep.subr.mxu1 %v990_v56  ;;  %v973_v56 = vld [vmem:[#allocation8 + $0x30] sm:$0xff] }
  0xe8   : > { %1550 = vmatprep.subr.mxu0 %v864_v28  ;;  %1020 = vmatpush1.msra.mxu1 %v989_v57  ;;  %v972_v57 = vld [vmem:[#allocation8 + $0x28] sm:$0xff] }
  0xe9   : > { %1551 = vmatpush3.msra.mxu0 %v848_v29  ;;  %1021 = vmatprep.subr.mxu1 %v988_v58  ;;  %v971_v58 = vld [vmem:[#allocation8 + $0x20] sm:$0xff] }
  0xea   : > { %1552 = vmatprep.subr.mxu0 %v863_v30  ;;  %1022 = vmatpush1.msra.mxu1 %v987_v59  ;;  %v970_v59 = vld [vmem:[#allocation8 + $0x18] sm:$0xff] }
  0xeb   : > { %1553 = vmatpush3.msra.mxu0 %v847_v31  ;;  %1023 = vmatprep.subr.mxu1 %v986_v60  ;;  %v969_v60 = vld [vmem:[#allocation8 + $0x10] sm:$0xff] }
  0xec   : > { %1554 = vmatprep.subr.mxu0 %v862_v32  ;;  %1024 = vmatpush1.msra.mxu1 %v985_v61  ;;  %v968_v61 = vld [vmem:[#allocation8 + $0x8] sm:$0xff] }
  0xed   : > { %1555 = vmatpush3.msra.mxu0 %v846_v33  ;;  %1025 = vmatprep.subr.mxu1 %v984_v62  ;;  %v967_v62 = vld [vmem:[#allocation8] sm:$0xff] }
  0xee   : > { %1556 = vmatprep.subr.mxu0 %v861_v34  ;;  %1026 = vmatpush1.msra.mxu1 %v983_v63  ;;  %v2029_v63 = vmov 0.0  }
  0xef   : > { %1557 = vmatpush3.msra.mxu0 %v845_v35  ;;  %1027 = vmatprep.subr.mxu1 %v982_v0  ;;  %v1139_v0 = vld [vmem:[#allocation10 + $0xf8] sm:$0xff] }
  0xf0   : > { %1558 = vmatprep.subr.mxu0 %v860_v36  ;;  %1028 = vmatpush1.msra.mxu1 %v981_v1  ;;  %v1123_v1 = vld [vmem:[#allocation10 + $0x78] sm:$0xff] }
  0xf1   : > { %1559 = vmatpush3.msra.mxu0 %v844_v37  ;;  %1029 = vmatprep.subr.mxu1 %v980_v2  ;;  %v1138_v2 = vld [vmem:[#allocation10 + $0xf0] sm:$0xff] }
  0xf2   : > { %1560 = vmatprep.subr.mxu0 %v859_v38  ;;  %1030 = vmatpush1.msra.mxu1 %v979_v3  ;;  %v1122_v3 = vld [vmem:[#allocation10 + $0x70] sm:$0xff] }
  0xf3   : > { %1561 = vmatpush3.msra.mxu0 %v843_v39  ;;  %1031 = vmatprep.subr.mxu1 %v978_v4  ;;  %v1137_v4 = vld [vmem:[#allocation10 + $0xe8] sm:$0xff] }
  0xf4   : > { %1562 = vmatprep.subr.mxu0 %v858_v40  ;;  %1032 = vmatpush1.msra.mxu1 %v977_v5  ;;  %v1121_v5 = vld [vmem:[#allocation10 + $0x68] sm:$0xff] }
  0xf5   : > { %1563 = vmatpush3.msra.mxu0 %v842_v41  ;;  %1033 = vmatprep.subr.mxu1 %v976_v6  ;;  %v1136_v6 = vld [vmem:[#allocation10 + $0xe0] sm:$0xff] }
  0xf6   : > { %1564 = vmatprep.subr.mxu0 %v857_v42  ;;  %1034 = vmatpush1.msra.mxu1 %v975_v54  ;;  %v1124_v54 = vld [vmem:[#allocation10 + $0x80] sm:$0xff] }
  0xf7   : > { %1565 = vmatpush3.msra.mxu0 %v841_v43  ;;  %1035 = vmatprep.subr.mxu1 %v974_v55  ;;  %v1108_v55 = vld [vmem:[#allocation10] sm:$0xff] }
  0xf8   : > { %1566 = vmatprep.subr.mxu0 %v856_v44  ;;  %1036 = vmatpush1.msra.mxu1 %v973_v56  ;;  %v1255_v56 = vld [vmem:[#allocation11 + $0x78] sm:$0xff] }
  0xf9   : > { %1567 = vmatpush3.msra.mxu0 %v840_v45  ;;  %1037 = vmatprep.subr.mxu1 %v972_v57  ;;  %v1254_v57 = vld [vmem:[#allocation11 + $0x70] sm:$0xff] }
  0xfa   : > { %1568 = vmatprep.subr.mxu0 %v855_v46  ;;  %1038 = vmatpush1.msra.mxu1 %v971_v58  ;;  %v1253_v58 = vld [vmem:[#allocation11 + $0x68] sm:$0xff] }
  0xfb   : > { %1569 = vmatpush3.msra.mxu0 %v839_v47  ;;  %1039 = vmatprep.subr.mxu1 %v970_v59  ;;  %v1252_v59 = vld [vmem:[#allocation11 + $0x60] sm:$0xff] }
  0xfc   : > { %1040 = vmatpush1.msra.mxu1 %v969_v60  ;;  %1075 = vmatprep.mubr.f32.mxu1 %v2029_v63  ;;  %v1251_v60 = vld [vmem:[#allocation11 + $0x58] sm:$0xff] }
  0xfd   : > { %1041 = vmatprep.subr.mxu1 %v968_v61  ;;  %1582 = vmatprep.subr.mxu0 %v1139_v0  ;;  %v1250_v61 = vld [vmem:[#allocation11 + $0x50] sm:$0xff]  ;;  %v1247_v0 = vld [vmem:[#allocation11 + $0x38] sm:$0xff] }
  0xfe   : > { %1042 = vmatpush1.msra.mxu1 %v967_v62  ;;  %v1249_v62 = vld [vmem:[#allocation11 + $0x48] sm:$0xff] }
  0xff   : > { %1646 = vmatprep.subr.mxu1 %v1255_v56 }
 0x196   : > { %v719_v14 = vpop.f32.mrf.mxu0 }
 0x197   : > { %v808_v15 = vpop.f32.mrf.mxu1  ;;  %v720_v16 = vadd.f32 %v719_v14, %v646_v12  ;;  %v1118_v14 = vld [vmem:[#allocation10 + $0x50] sm:$0xff] }
 0x198   : > { %v721_v17 = vpop.f32.mrf.mxu0 }
 0x199   : > { %v810_v18 = vpop.f32.mrf.mxu1  ;;  %v722_v19 = vadd.f32 %v721_v17, %v650_v13  ;;  %v809_v20 = vadd.f32 %v808_v15, %v720_v16  ;;  %v1133_v15 = vld [vmem:[#allocation10 + $0xc8] sm:$0xff]  ;;  %v1132_v17 = vld [vmem:[#allocation10 + $0xc0] sm:$0xff] }
 0x19a   : > { %v725_v21 = vpop.f32.mrf.mxu0  ;;  %v1117_v16 = vld [vmem:[#allocation10 + $0x48] sm:$0xff] }
 0x19b   : > { %v814_v22 = vpop.f32.mrf.mxu1  ;;  %v811_v23 = vadd.f32 %v810_v18, %v722_v19  ;;  %v726_v24 = vadd.f32 %v725_v21, %v646_v12  ;;  %v831_v29 = vmax.f32 %v809_v20, 0.0  ;;  %v1116_v18 = vld [vmem:[#allocation10 + $0x40] sm:$0xff]  ;;  %v1131_v19 = vld [vmem:[#allocation10 + $0xb8] sm:$0xff]  ;;  %v1130_v21 = vld [vmem:[#allocation10 + $0xb0] sm:$0xff] }
 0x19c   : > { %v727_v25 = vpop.f32.mrf.mxu0  ;;  %v1115_v20 = vld [vmem:[#allocation10 + $0x38] sm:$0xff] }
 0x19d   : > { %v816_v26 = vpop.f32.mrf.mxu1  ;;  %v832_v27 = vmax.f32 %v811_v23, 0.0  ;;  %v728_v28 = vadd.f32 %v727_v25, %v650_v13  ;;  %v815_v30 = vadd.f32 %v814_v22, %v726_v24  ;;  %v1114_v22 = vld [vmem:[#allocation10 + $0x30] sm:$0xff]  ;;  %v1129_v23 = vld [vmem:[#allocation10 + $0xa8] sm:$0xff]  ;;  %v1128_v25 = vld [vmem:[#allocation10 + $0xa0] sm:$0xff] }
 0x19e   : > { %v731_v31 = vpop.f32.mrf.mxu0  ;;  %v1113_v24 = vld [vmem:[#allocation10 + $0x28] sm:$0xff] }
 0x19f   : > { %v820_v32 = vpop.f32.mrf.mxu1  ;;  %v817_v33 = vadd.f32 %v816_v26, %v728_v28  ;;  %v732_v34 = vadd.f32 %v731_v31, %v646_v12  ;;  %942 = vmatprep.mubr.f32.mxu0 %v832_v27  ;;  %v833_v39 = vmax.f32 %v815_v30, 0.0  ;;  %v1112_v26 = vld [vmem:[#allocation10 + $0x20] sm:$0xff] }
 0x1a0   : > { %v733_v35 = vpop.f32.mrf.mxu0  ;;  %943 = vmatmul.mubr.f32.vlgmr.msra.gmra.mxu0 %v831_v29  ;;  %v1522_v28 = vld [vmem:[%s2427_s4] ss:$0 sm:$0xff] }
 0x1a1   : > { %v822_v36 = vpop.f32.mrf.mxu1  ;;  %v834_v37 = vmax.f32 %v817_v33, 0.0  ;;  %v734_v38 = vadd.f32 %v733_v35, %v650_v13  ;;  %v821_v40 = vadd.f32 %v820_v32, %v732_v34  ;;  %1583 = vmatpush3.msra.mxu0 %v1123_v1  ;;  %v999_v1 = vld [vmem:[%s2429_s6] sm:$0x3] }
 0x1a2   : > { %v737_v41 = vpop.f32.mrf.mxu0  ;;  %1584 = vmatprep.subr.mxu0 %v1138_v2  ;;  %v1004_v2 = vrot.slane %v999_v1, %v645_v9 }
 0x1a3   : > { %v826_v42 = vpop.f32.mrf.mxu1  ;;  %v823_v43 = vadd.f32 %v822_v36, %v734_v38  ;;  %v738_v44 = vadd.f32 %v737_v41, %v646_v12  ;;  %947 = vmatprep.mubr.f32.mxu0 %v834_v37  ;;  %v835_v48 = vmax.f32 %v821_v40, 0.0  ;;  %1585 = vmatpush3.msra.mxu0 %v1122_v3  ;;  %v1119_v12 = vld [vmem:[#allocation10 + $0x58] sm:$0xff]  ;;  %v1008_v3 = vrot.slane %v999_v1, %v649_v11 }
 0x1a4   : > { %v739_v45 = vpop.f32.mrf.mxu0  ;;  %948 = vmatmul.mubr.f32.gmra.mxu0 %v833_v39  ;;  %1586 = vmatprep.subr.mxu0 %v1137_v4 }
 0x1a5   : > { %v836_v46 = vmax.f32 %v823_v43, 0.0  ;;  %v740_v47 = vadd.f32 %v739_v45, %v650_v13  ;;  %v827_v49 = vadd.f32 %v826_v42, %v738_v44  ;;  %v828_v50 = vpop.f32.mrf.mxu1  ;;  %1587 = vmatpush3.msra.mxu0 %v1121_v5  ;;  %v1134_v13 = vld [vmem:[#allocation10 + $0xd0] sm:$0xff] }
 0x1a6   : > { %1588 = vmatprep.subr.mxu0 %v1136_v6 }
 0x1a7   : > { %v829_v51 = vadd.f32 %v828_v50, %v740_v47  ;;  %952 = vmatprep.mubr.f32.mxu0 %v836_v46  ;;  %v837_v53 = vmax.f32 %v827_v49, 0.0  ;;  %1589 = vmatpush3.msra.mxu0 %v1120_v7  ;;  %v1111_v49 = vld [vmem:[#allocation10 + $0x18] sm:$0xff]  ;;  %v1126_v50 = vld [vmem:[#allocation10 + $0x90] sm:$0xff] }
 0x1a8   : > { %953 = vmatmul.mubr.f32.gmra.mxu0 %v835_v48  ;;  %1590 = vmatprep.subr.mxu0 %v1135_v10  ;;  %v1127_v48 = vld [vmem:[#allocation10 + $0x98] sm:$0xff] }
 0x1a9   : > { %v838_v52 = vmax.f32 %v829_v51, 0.0  ;;  %1591 = vmatpush3.msra.mxu0 %v1119_v12  ;;  %v1110_v51 = vld [vmem:[#allocation10 + $0x10] sm:$0xff] }
 0x1aa   : > { %1592 = vmatprep.subr.mxu0 %v1134_v13 }
 0x1ab   : > { %957 = vmatprep.mubr.f32.mxu0 %v838_v52  ;;  %1593 = vmatpush3.msra.mxu0 %v1118_v14  ;;  %v1125_v52 = vld [vmem:[#allocation10 + $0x88] sm:$0xff] }
 0x1ac   : > { %958 = vmatmul.mubr.f32.gmra.mxu0 %v837_v53  ;;  %1594 = vmatprep.subr.mxu0 %v1133_v15  ;;  %v1109_v53 = vld [vmem:[#allocation10 + $0x8] sm:$0xff] }
 0x1ad   : > { %1595 = vmatpush3.msra.mxu0 %v1117_v16 }
 0x1ae   : > { %1596 = vmatprep.subr.mxu0 %v1132_v17 }
 0x1af   : > { %1597 = vmatpush3.msra.mxu0 %v1116_v18 }
 0x1b0   : > { %1598 = vmatprep.subr.mxu0 %v1131_v19 }
 0x1b1   : > { %1599 = vmatpush3.msra.mxu0 %v1115_v20 }
 0x1b2   : > { %1600 = vmatprep.subr.mxu0 %v1130_v21 }
 0x1b3   : > { %1601 = vmatpush3.msra.mxu0 %v1114_v22 }
 0x1b4   : > { %1602 = vmatprep.subr.mxu0 %v1129_v23 }
 0x1b5   : > { %1603 = vmatpush3.msra.mxu0 %v1113_v24 }
 0x1b6   : > { %1604 = vmatprep.subr.mxu0 %v1128_v25 }
 0x1b7   : > { %1605 = vmatpush3.msra.mxu0 %v1112_v26 }
 0x1b8   : > { %1606 = vmatprep.subr.mxu0 %v1127_v48 }
 0x1b9   : > { %1607 = vmatpush3.msra.mxu0 %v1111_v49 }
 0x1ba   : > { %1608 = vmatprep.subr.mxu0 %v1126_v50 }
 0x1bb   : > { %1609 = vmatpush3.msra.mxu0 %v1110_v51 }
 0x1bc   : > { %1610 = vmatprep.subr.mxu0 %v1125_v52 }
 0x1bd   : > { %1611 = vmatpush3.msra.mxu0 %v1109_v53 }
 0x1be   : > { %1612 = vmatprep.subr.mxu0 %v1124_v54 }
 0x1bf   : > { %1613 = vmatpush3.msra.mxu0 %v1108_v55 }
 0x260   : > { %v1570_v27 = vpop.f32.mrf.mxu0 }
 0x262   : > { %v1571_v29 = vpop.f32.mrf.mxu0 }
 0x263   : > { %v1572_v30 = vadd.f32 %v1571_v29, %v1570_v27  ;;  %v1245_v29 = vld [vmem:[#allocation11 + $0x28] sm:$0xff] }
 0x264   : > { %v1573_v31 = vpop.f32.mrf.mxu0 }
 0x265   : > { %v2317_v32 = vadd.f32 %v1572_v30, %v1522_v28  ;;  %v1244_v30 = vld [vmem:[#allocation11 + $0x20] sm:$0xff] }
 0x266   : > { %v1574_v33 = vpop.f32.mrf.mxu0 }
 0x267   : > { %v963_v34 = vmax.f32 %v2317_v32, 0.0  ;;  %v1575_v35 = vadd.f32 %v1574_v33, %v1573_v31  ;;  %v1243_v31 = vld [vmem:[#allocation11 + $0x18] sm:$0xff]  ;;  %v1242_v33 = vld [vmem:[#allocation11 + $0x10] sm:$0xff] }
 0x268   : > { %v1576_v36 = vpop.f32.mrf.mxu0 }
 0x269   : > { %v2320_v37 = vadd.f32 %v1575_v35, %v1522_v28  ;;  %1076 = vmatmul.mubr.f32.vlgmr.msra.gmra.mxu1 %v963_v34  ;;  %v1241_v35 = vld [vmem:[#allocation11 + $0x8] sm:$0xff] }
 0x26a   : > { %v1577_v38 = vpop.f32.mrf.mxu0  ;;  %1081 = vmatprep.mubr.f32.mxu1 %v2029_v63  ;;  %1647 = vmatpush3.msra.mxu1 %v1255_v56 }
 0x26b   : > { %v964_v39 = vmax.f32 %v2320_v37, 0.0  ;;  %v1578_v40 = vadd.f32 %v1577_v38, %v1576_v36  ;;  %1648 = vmatprep.subr.mxu1 %v1254_v57  ;;  %v1240_v36 = vld [vmem:[#allocation11] sm:$0xff] }
 0x26c   : > { %v1579_v41 = vpop.f32.mrf.mxu0  ;;  %1649 = vmatpush3.msra.mxu1 %v1254_v57 }
 0x26d   : > { %v2326_v42 = vadd.f32 %v1578_v40, %v1522_v28  ;;  %1082 = vmatmul.mubr.f32.gmra.mxu1 %v964_v39  ;;  %1650 = vmatprep.subr.mxu1 %v1253_v58  ;;  %v1523_v40 = vld [vmem:[%s2431_s8] ss:$0 sm:$0xff] }
 0x26e   : > { %v1580_v43 = vpop.f32.mrf.mxu0  ;;  %1087 = vmatprep.mubr.f32.mxu1 %v2029_v63  ;;  %1651 = vmatpush3.msra.mxu1 %v1253_v58 }
 0x26f   : > { %v965_v44 = vmax.f32 %v2326_v42, 0.0  ;;  %v1581_v45 = vadd.f32 %v1580_v43, %v1579_v41  ;;  %1652 = vmatprep.subr.mxu1 %v1252_v59 }
 0x270   : > { %1653 = vmatpush3.msra.mxu1 %v1252_v59 }
 0x271   : > { %v2332_v46 = vadd.f32 %v1581_v45, %v1522_v28  ;;  %1088 = vmatmul.mubr.f32.gmra.mxu1 %v965_v44  ;;  %1654 = vmatprep.subr.mxu1 %v1251_v60  ;;  %v1246_v28 = vld [vmem:[#allocation11 + $0x30] sm:$0xff] }
 0x272   : > { %1093 = vmatprep.mubr.f32.mxu1 %v2029_v63  ;;  %1655 = vmatpush3.msra.mxu1 %v1251_v60  ;;  %v1248_v63 = vld [vmem:[#allocation11 + $0x40] sm:$0xff] }
 0x273   : > { %v966_v47 = vmax.f32 %v2332_v46, 0.0  ;;  %1656 = vmatprep.subr.mxu1 %v1250_v61 }
 0x274   : > { %1657 = vmatpush3.msra.mxu1 %v1250_v61 }
 0x275   : > { %1094 = vmatmul.mubr.f32.gmra.mxu1 %v966_v47  ;;  %1658 = vmatprep.subr.mxu1 %v1249_v62 }
 0x276   : > { %1659 = vmatpush3.msra.mxu1 %v1249_v62 }
 0x277   : > { %1660 = vmatprep.subr.mxu1 %v1248_v63 }
 0x278   : > { %1661 = vmatpush3.msra.mxu1 %v1248_v63 }
 0x279   : > { %1662 = vmatprep.subr.mxu1 %v1247_v0 }
 0x27a   : > { %1663 = vmatpush3.msra.mxu1 %v1247_v0 }
 0x27b   : > { %1664 = vmatprep.subr.mxu1 %v1246_v28 }
 0x27c   : > { %1665 = vmatpush3.msra.mxu1 %v1246_v28 }
 0x27d   : > { %1666 = vmatprep.subr.mxu1 %v1245_v29 }
 0x27e   : > { %1667 = vmatpush3.msra.mxu1 %v1245_v29 }
 0x27f   : > { %1668 = vmatprep.subr.mxu1 %v1244_v30 }
 0x280   : > { %1669 = vmatpush3.msra.mxu1 %v1244_v30 }
 0x281   : > { %1670 = vmatprep.subr.mxu1 %v1243_v31 }
 0x282   : > { %1671 = vmatpush3.msra.mxu1 %v1243_v31 }
 0x283   : > { %1672 = vmatprep.subr.mxu1 %v1242_v33 }
 0x284   : > { %1673 = vmatpush3.msra.mxu1 %v1242_v33 }
 0x285   : > { %1674 = vmatprep.subr.mxu1 %v1241_v35 }
 0x286   : > { %1675 = vmatpush3.msra.mxu1 %v1241_v35 }
 0x287   : > { %1676 = vmatprep.subr.mxu1 %v1240_v36 }
 0x288   : > { %1677 = vmatpush3.msra.mxu1 %v1240_v36 }
 0x329   : > { %v1077_v4 = vpop.f32.mrf.mxu1 }
 0x32a   : > { %v1078_v5 = vadd.f32 %v1077_v4, %v1004_v2 }
 0x32b   : > { %v1079_v6 = vpop.f32.mrf.mxu1 }
 0x32c   : > { %v1080_v7 = vadd.f32 %v1079_v6, %v1008_v3  ;;  %v1100_v13 = vmax.f32 %v1078_v5, 0.0 }
 0x32d   : > { %v1083_v10 = vpop.f32.mrf.mxu1 }
 0x32e   : > { %v1101_v12 = vmax.f32 %v1080_v7, 0.0  ;;  %v1084_v14 = vadd.f32 %v1083_v10, %v1004_v2 }
 0x32f   : > { %v1085_v15 = vpop.f32.mrf.mxu1 }
 0x330   : > { %v1086_v16 = vadd.f32 %v1085_v15, %v1008_v3  ;;  %1211 = vmatprep.mubr.f32.mxu0 %v1101_v12  ;;  %v1102_v19 = vmax.f32 %v1084_v14, 0.0 }
 0x331   : > { %v1089_v17 = vpop.f32.mrf.mxu1  ;;  %1212 = vmatmul.mubr.f32.vlgmr.msra.gmra.mxu0 %v1100_v13 }
 0x332   : > { %v1103_v18 = vmax.f32 %v1086_v16, 0.0  ;;  %v1090_v20 = vadd.f32 %v1089_v17, %v1004_v2 }
 0x333   : > { %v1091_v9 = vpop.f32.mrf.mxu1 }
 0x334   : > { %v1092_v21 = vadd.f32 %v1091_v9, %v1008_v3  ;;  %1216 = vmatprep.mubr.f32.mxu0 %v1103_v18  ;;  %v1104_v22 = vmax.f32 %v1090_v20, 0.0 }
 0x335   : > { %v1095_v8 = vpop.f32.mrf.mxu1  ;;  %1217 = vmatmul.mubr.f32.gmra.mxu0 %v1102_v19 }
 0x336   : > { %v1105_v11 = vmax.f32 %v1092_v21, 0.0  ;;  %v1096_v23 = vadd.f32 %v1095_v8, %v1004_v2 }
 0x337   : > { %v1097_v24 = vpop.f32.mrf.mxu1 }
 0x338   : > { %v1098_v25 = vadd.f32 %v1097_v24, %v1008_v3  ;;  %1221 = vmatprep.mubr.f32.mxu0 %v1105_v11  ;;  %v1106_v27 = vmax.f32 %v1096_v23, 0.0 }
 0x339   : > { %1222 = vmatmul.mubr.f32.gmra.mxu0 %v1104_v22 }
 0x33a   : > { %v1107_v26 = vmax.f32 %v1098_v25, 0.0 }
 0x33c   : > { %1226 = vmatprep.mubr.f32.mxu0 %v1107_v26 }
 0x33d   : > { %1227 = vmatmul.mubr.f32.gmra.mxu0 %v1106_v27 }
 0x3f1   : > { %v1614_v38 = vpop.f32.mrf.mxu0 }
 0x3f3   : > { %v1615_v41 = vpop.f32.mrf.mxu0 }
 0x3f4   : > { %v1616_v43 = vadd.f32 %v1615_v41, %v1614_v38 }
 0x3f5   : > { %v1617_v45 = vpop.f32.mrf.mxu0 }
 0x3f6   : > { %v1214_v48 = vadd.f32 %v1616_v43, %v1523_v40 }
 0x3f7   : > { %v1618_v49 = vpop.f32.mrf.mxu0 }
 0x3f8   : > { %v1619_v50 = vadd.f32 %v1618_v49, %v1617_v45  ;;  %v1232_v51 = vadd.f32 %v1214_v48, %v963_v34 }
 0x3f9   : > { %v1620_v52 = vpop.f32.mrf.mxu0 }
 0x3fa   : > { %v1219_v53 = vadd.f32 %v1619_v50, %v1523_v40  ;;  %v1236_v54 = vmax.f32 %v1232_v51, 0.0 }
 0x3fb   : > { %v1621_v55 = vpop.f32.mrf.mxu0 }
 0x3fc   : > { %v1233_v56 = vadd.f32 %v1219_v53, %v964_v39  ;;  %v1622_v57 = vadd.f32 %v1621_v55, %v1620_v52  ;;  %1678 = vmatprep.mubr.f32.mxu1 %v1236_v54  ;;  %v1524_v39 = vld [vmem:[%s2433_s10] ss:$0 sm:$0xff] }
 0x3fd   : > { %v1623_v58 = vpop.f32.mrf.mxu0 }
 0x3fe   : > { %v1237_v59 = vmax.f32 %v1233_v56, 0.0  ;;  %v1224_v60 = vadd.f32 %v1622_v57, %v1523_v40 }
 0x3ff   : > { %v1624_v61 = vpop.f32.mrf.mxu0 }
 0x400   : > { %v1625_v62 = vadd.f32 %v1624_v61, %v1623_v58  ;;  %1679 = vmatmul.mubr.f32.vlgmr.msra.gmra.mxu1 %v1237_v59  ;;  %v1234_v32 = vadd.f32 %v1224_v60, %v965_v44 }
 0x402   : > { %v1229_v34 = vadd.f32 %v1625_v62, %v1523_v40  ;;  %v1238_v63 = vmax.f32 %v1234_v32, 0.0 }
 0x404   : > { %1681 = vmatprep.mubr.f32.mxu1 %v1238_v63  ;;  %v1235_v0 = vadd.f32 %v1229_v34, %v966_v47 }
 0x406   : > { %v1239_v37 = vmax.f32 %v1235_v0, 0.0 }
 0x408   : > { %1682 = vmatmul.mubr.f32.gmra.mxu1 %v1239_v37 }
 0x4c0   : > { %v1680_v1 = vpop.f32.mrf.mxu1 }
 0x4c1   : > { %v1335_v2 = vadd.f32 %v1680_v1, %v1524_v39 }
 0x4c2   : > { %v1329_v3 = vpop.f32.mrf.mxu1 }
 0x4c3   : > { %v1349_v4 = vmax.f32 %v1335_v2, 0.0  ;;  %v1330_v42 = vadd.f32 %v1524_v39, %v1329_v3 }
 0x4c5   : > { %1353 = vst [vmem:[%s485_s24 + $0x8] sm:$0xff] %v1349_v4  ;;  %v1348_v44 = vmax.f32 %v1330_v42, 0.0 }
 0x4c7   : > { %1352 = vst [vmem:[%s485_s24] sm:$0xff] %v1348_v44 }
 0x4c8   : > { %v1683_v5 = vpop.f32.mrf.mxu1 }
 0x4c9   : > { %v1345_v46 = vadd.f32 %v1683_v5, %v1524_v39 }
 0x4ca   : > { %v1339_v47 = vpop.f32.mrf.mxu1 }
 0x4cb   : > { %v1351_v6 = vmax.f32 %v1345_v46, 0.0  ;;  %v1340_v7 = vadd.f32 %v1524_v39, %v1339_v47  ;;  %1363 = sbr.rel (!%p2465_p3) target bundleno = 1260 (0x4ec), region = 92 }
 0x4cd   : > { %1355 = vst [vmem:[%s485_s24 + $0x18] sm:$0xff] %v1351_v6  ;;  %v1350_v10 = vmax.f32 %v1340_v7, 0.0 }
 0x4cf   : > { %1354 = vst [vmem:[%s485_s24 + $0x10] sm:$0xff] %v1350_v10 }
 0x4d0   : > { %s2478_s30 = smov (!%p1366_p7, %s1365_s30), 4 }
 0x4d1   : > { %s2366_s28 = sshll.u32 %s2478_s30, 7 }
 0x4d2   : > { %s1370_s12 = ssub.s32 512, %s2366_s28 }
 0x4d3   : > { %1371 = vsyncadd %s1357_s15, %s1370_s12  ;;  %p1528_p0 = scmp.ne.s32.totalorder %s2366_s28, 0  ;;  %s1537_s23 = sshll.u32 %s2114_s21, 9 }
 0x4d4   : > { %s2466_s22 = sld [smem:[#allocation24_spill]]  ;;  %s1376_s25 = sshll.u32 %s485_s24, 4  ;;  %s2378_s25 = int_to_ptr.vmem [resolvable:$true] %s1376_s25 }
 0x4d5   : > { %s1939_s27 = scalar_lea.vmem %s2378_s25, %s2366_s28  ;;  %s2030_s11 = smov [#allocation13]  }
 0x4d6   : > { %p1940_p2 = scmp.ne.s32.totalorder %s2378_s25, %s1939_s27  ;;  %s1943_s17 = sshll.u32 %s2030_s11, 4  ;;  %s1944_s17 = int_to_ptr.vmem [resolvable:$false] %s1943_s17 }
 0x4d7   : > { %s1945_s21 = scalar_lea.vmem %s1944_s17, 1024  ;;  %p1946_p11 = scmp.lt.s32.totalorder %s2378_s25, %s1944_s17 }
 0x4d8   : > { %p1941_p4 = pnand %p1940_p2, %p1528_p0  ;;  %p1947_p5 = scmp.lt.s32.totalorder %s1945_s21, %s1939_s27 }
 0x4da   : > { %s2376_s16 = scalar_lea.hbm %s2466_s22, %s1537_s23  ;;  %p1942_p12 = pneg %p1941_p4 }
 0x4db   : > { %p1948_p8 = por %p1947_p5, %p1946_p11 }
 0x4dd   : > { %p1949_p10 = pnand %p1948_p8, %p1942_p12 }
 0x4df   : > { %1952 = shalt.err (!%p1949_p10)
}
 0x4e0   : > { %s1953_s1 = scalar_lea.hbm %s2376_s16, %s2366_s28  ;;  %s1957_s30 = scalar_lea.hbm %s2466_s22, 896 }
 0x4e1   : > { %p1954_p6 = scmp.ne.s32.totalorder %s2376_s16, %s1953_s1  ;;  %p1958_p3 = scmp.lt.s32.totalorder %s2376_s16, %s2466_s22 }
 0x4e2   : > { %p1959_p7 = scmp.lt.s32.totalorder %s1957_s30, %s1953_s1 }
 0x4e3   : > { %p1955_p13 = pnand %p1954_p6, %p1528_p0 }
 0x4e4   : > { %p1960_p2 = por %p1959_p7, %p1958_p3 }
 0x4e5   : > { %p1956_p1 = pneg %p1955_p13 }
 0x4e7   : > { %p1961_p4 = pnand %p1960_p2, %p1956_p1 }
 0x4e9   : > { %1964 = shalt.err (!%p1961_p4)
}
 0x4ea   : > { %s2031_s29 = smov 128   ;;  %s2032_s14 = smov 8  }
 0x4eb   : > { %1382 = dma.vmem_to_hbm [thread:$0]  (%p1528_p0), %s2378_s25, %s2366_s28, %s2376_s16, %s1357_s15, %s2031_s29, %s2031_s29, %s2032_s14  }
 0x4ec PF: > { %s2467_s27 = sld [smem:[#allocation19_spill]] }
 0x4ed   : > { %s2468_s11 = sld [smem:[#allocation22_spill]] }
 0x4f2   : > { %s1391_s17 = sand.u32 1, %s2467_s27  }
 0x4f3   : > { %p2469_p12 = scmp.ne.s32.totalorder %s2468_s11, 0  ;;  %s1392_s21 = scalar_lea.sflag [#allocation4], %s1391_s17 }
 0x4f5   : > { %p1723_p11 = pnand %p1504_p9, %p2469_p12 }
 0x4f7   : > { %p1724_p5 = pneg %p1723_p11 }
 0x4f9   : > { %1998 = dma.done.wait (%p1724_p5), %s1392_s21, 512  }
 0x4fa   : > { %2000 = vsyncadd (%p1724_p5), %s1392_s21, 4294966784  ;;  %s2470_s20 = sld [smem:[#allocation20_spill]]  ;;  %s2472_s17 = smov %s2007_s18 }
 0x4fb   : > { %s2471_s1 = sld [smem:[#allocation21_spill]]  ;;  %s2473_s18 = smov %s2011_s19 }
 0x500   : > { %p27_p8 = scmp.ge.s32.totalorder %s2470_s20, 4  }
 0x501   : > { %s2474_s19 = smov %s2471_s1 }
 0x502   :  { %29 = sbr.rel (!%p27_p8) target bundleno = 11 (0xb), region = 129 }
 0x507   :  { %1397 = vsyncpa [#allocation3], 1 }
 0x508   :  { %1399 = vsyncpa [#allocation3 + $0x1], 1 }
 0x509   :  { %1400 = vsyncpa [#allocation6], 1 }
 0x50a   :  { %1401 = vsyncpa [#allocation9], 1 }
 0x50b   :  { %1402 = vsyncpa [#allocation12], 1 }
 0x50c   :  { %1403 = vsyncpa [#allocation4], 1 }
 0x50d   :  { %1405 = vsyncpa [#allocation4 + $0x1], 1 }

</bundles_post_ra>
